<compile_context>
chip_gen: v7x
topology: tpu7x:2x2x1
jax: 0.10.0
libtpu: 0.0.40
codegen_flags: <defaults>
</compile_context>

<pallas_src>
import functools

import jax
import jax.numpy as jnp
from jax.experimental import pallas as pl
from jax.experimental.pallas import tpu as pltpu


def _round_up(x, m):
    return -(-x // m) * m


def _lstm_net_kernel(x_ref, h0_ref, c0_ref,
                     w_ih_t_ref, w_hh_t_ref, b_ref, w_out_t_ref, b_out_ref,
                     y_ref, h_out_ref, c_out_ref,
                     h_carry, c_carry, h_hist, xg,
                     *, hidden_size, block_T, rows_per_step, unroll):
    """Grid = (batch_shards, n_time_blocks).  One grid step runs `block_T`
    LSTM timesteps for one batch shard, then a single batched output
    projection (Linear + tanh, gated by the input)."""
    g = pl.program_id(1)          # time-block index (serial / "arbitrary")
    H = hidden_size
    B = rows_per_step             # padded batch rows per shard (multiple of 8)

    # Initialize the recurrent carry from the provided hidden state at the
    # first time block of every batch shard.
    @pl.when(g == 0)
    def _():
        h_carry[...] = h0_ref[...]
        c_carry[...] = c0_ref[...]

    # Hoisted input contribution for ALL block_T timesteps: one batched,
    # MXU-friendly matmul that pipelines with the x DMA instead of sitting on
    # the serial recurrence path.  Bias folded in here (once per block).
    xg[...] = jnp.dot(x_ref[...], w_ih_t_ref[...],
                      preferred_element_type=jnp.float32) + b_ref[...]

    w_hh_t = w_hh_t_ref[...]      # (H, 4H), loop-invariant load

    def step(t, carry):
        h, c = carry
        row0 = pl.multiple_of(t * B, B)          # B % 8 == 0 -> aligned slices
        gates = xg[pl.ds(row0, B), :] + jnp.dot(
            h, w_hh_t, preferred_element_type=jnp.float32)   # (B, 4H)

        # PyTorch gate order [i, f, g, o].
        if 4 * H <= 128:
            # All four gates fit one vreg lane span: one full-vreg sigmoid.
            sig = jax.nn.sigmoid(gates)
            i_g = sig[:, 0 * H:1 * H]
            f_g = sig[:, 1 * H:2 * H]
            o_g = sig[:, 3 * H:4 * H]
        else:
            # Larger H: don't waste EUP work on the g-gate columns.
            i_g = jax.nn.sigmoid(gates[:, 0 * H:1 * H])
            f_g = jax.nn.sigmoid(gates[:, 1 * H:2 * H])
            o_g = jax.nn.sigmoid(gates[:, 3 * H:4 * H])
        g_g = jnp.tanh(gates[:, 2 * H:3 * H])

        c_new = f_g * c + i_g * g_g
        h_new = o_g * jnp.tanh(c_new)

        # Record h_t for the batched output projection after the loop.
        h_hist[pl.ds(row0, B), :] = h_new
        return h_new, c_new

    h_fin, c_fin = jax.lax.fori_loop(
        0, block_T, step, (h_carry[...], c_carry[...]), unroll=unroll)

    h_carry[...] = h_fin
    c_carry[...] = c_fin

    # Batched output projection for all block_T timesteps at once, stored as
    # one lane-dense slab:  y = tanh(H_all @ W_out^T + b_out) * X_all.
    lin = jnp.dot(h_hist[...], w_out_t_ref[...],
                  preferred_element_type=jnp.float32) + b_out_ref[...]
    y_ref[...] = jnp.tanh(lin) * x_ref[...]

    # Final hidden state write-back only on the last time block.
    @pl.when(g == pl.num_programs(1) - 1)
    def _():
        h_out_ref[...] = h_fin
        c_out_ref[...] = c_fin


def network88tanh_forward(x_btf, h0, c0, params, block_T=None,
                          batch_shards=None):
    """x_btf: (B, T, F) float32 (batch_first, like PyTorch).
       h0, c0: (1, B, H).  Returns (output (B, T, F), (h_out, c_out))."""
    w_ih, w_hh, b_ih, b_hh, w_out, b_out = params
    B, T, F = x_btf.shape
    H = w_hh.shape[1]

    if block_T is None:
        block_T = T
    assert T % block_T == 0, "block_T must divide T"
    n_blocks = T // block_T

    # Batch shards map to TensorCores on v7x (parallel grid axis); on
    # single-TC chips (v5e/v6e) it is just an outer serial loop.
    if batch_shards is None:
        batch_shards = 2 if B >= 16 else 1

    # --- wrapper-side layout plumbing (done once, outside the kernel) -------
    # Pad batch rows per shard to a multiple of 8 (sublane tile) and features
    # to a multiple of 128 (lane-dense loads/stores, full MXU columns).
    B_shard = _round_up(-(-B // batch_shards), 8)
    B_pad = batch_shards * B_shard
    F_pad = _round_up(F, 128)
    rows_per_block = block_T * B_shard

    x_p = jnp.pad(x_btf, ((0, B_pad - B), (0, 0), (0, F_pad - F)))
    # layout: [shard, time, batch_within_shard, feature] folded to 2-D rows
    x_flat = (x_p.reshape(batch_shards, B_shard, T, F_pad)
              .transpose(0, 2, 1, 3)
              .reshape(batch_shards * T * B_shard, F_pad))

    h0_2d = jnp.pad(h0[0], ((0, B_pad - B), (0, 0)))          # (B_pad, H)
    c0_2d = jnp.pad(c0[0], ((0, B_pad - B), (0, 0)))          # (B_pad, H)

    w_ih_t = jnp.pad(jnp.transpose(w_ih), ((0, F_pad - F), (0, 0)))  # (F_pad,4H)
    w_hh_t = jnp.transpose(w_hh)                                     # (H, 4H)
    b = (b_ih + b_hh).reshape(1, 4 * H)
    w_out_t = jnp.pad(jnp.transpose(w_out), ((0, 0), (0, F_pad - F)))  # (H,F_pad)
    b_out2 = jnp.pad(b_out, (0, F_pad - F)).reshape(1, F_pad)

    kernel = functools.partial(
        _lstm_net_kernel, hidden_size=H, block_T=block_T,
        rows_per_step=B_shard, unroll=min(block_T, 8))

    # VMEM budget: double-buffered x/y blocks + scratch + weights, with
    # headroom, capped below the v7x per-TC 64 MiB physical size.
    def _bytes(*shape):
        n = 4
        for d in shape:
            n *= d
        return n
    vmem_need = (4 * _bytes(rows_per_block, F_pad)           # x,y double-buffered
                 + _bytes(rows_per_block, H)                 # h_hist
                 + _bytes(rows_per_block, 4 * H)             # xg
                 + 6 * _bytes(B_shard, H)                    # h/c in, out, carries
                 + _bytes(F_pad, 4 * H) + _bytes(H, 4 * H) + _bytes(H, F_pad)
                 + _bytes(1, 4 * H) + _bytes(1, F_pad))
    vmem_limit = min(max(4 * vmem_need, 16 << 20), 48 << 20)

    cost = pl.CostEstimate(
        flops=2 * T * B_pad * (F_pad * 4 * H + H * 4 * H + H * F_pad),
        transcendentals=T * B_pad * (6 * H + F_pad),
        bytes_accessed=2 * x_flat.size * 4 + 4 * B_pad * H * 4
                       + (w_ih_t.size + w_hh_t.size + w_out_t.size) * 4)

    y_flat, h_out, c_out = pl.pallas_call(
        kernel,
        out_shape=(
            jax.ShapeDtypeStruct((batch_shards * T * B_shard, F_pad), jnp.float32),
            jax.ShapeDtypeStruct((B_pad, H), jnp.float32),
            jax.ShapeDtypeStruct((B_pad, H), jnp.float32),
        ),
        grid_spec=pltpu.PrefetchScalarGridSpec(
            num_scalar_prefetch=0,
            grid=(batch_shards, n_blocks),
            in_specs=[
                pl.BlockSpec((rows_per_block, F_pad),
                             lambda s, g: (s * n_blocks + g, 0)),   # x block
                pl.BlockSpec((B_shard, H), lambda s, g: (s, 0)),    # h0 shard
                pl.BlockSpec((B_shard, H), lambda s, g: (s, 0)),    # c0 shard
                pl.BlockSpec((F_pad, 4 * H), lambda s, g: (0, 0)),  # W_ih^T
                pl.BlockSpec((H, 4 * H), lambda s, g: (0, 0)),      # W_hh^T
                pl.BlockSpec((1, 4 * H), lambda s, g: (0, 0)),      # b_ih+b_hh
                pl.BlockSpec((H, F_pad), lambda s, g: (0, 0)),      # W_out^T
                pl.BlockSpec((1, F_pad), lambda s, g: (0, 0)),      # b_out
            ],
            out_specs=[
                pl.BlockSpec((rows_per_block, F_pad),
                             lambda s, g: (s * n_blocks + g, 0)),   # y block
                pl.BlockSpec((B_shard, H), lambda s, g: (s, 0)),    # h_out
                pl.BlockSpec((B_shard, H), lambda s, g: (s, 0)),    # c_out
            ],
            scratch_shapes=[
                pltpu.VMEM((B_shard, H), jnp.float32),              # h carry
                pltpu.VMEM((B_shard, H), jnp.float32),              # c carry
                pltpu.VMEM((rows_per_block, H), jnp.float32),       # h history
                pltpu.VMEM((rows_per_block, 4 * H), jnp.float32),   # hoisted XG
            ],
        ),
        compiler_params=pltpu.CompilerParams(
            # batch shards are independent (v7x megacore); time blocks carry
            # the recurrence and must stay sequential.
            dimension_semantics=("parallel", "arbitrary"),
            vmem_limit_bytes=vmem_limit,
        ),
        cost_estimate=cost,
    )(x_flat, h0_2d, c0_2d, w_ih_t, w_hh_t, b, w_out_t, b_out2)

    # Undo wrapper layout: back to (B, T, F), drop padding.
    y_btf = (y_flat.reshape(batch_shards, T, B_shard, F_pad)
             .transpose(0, 2, 1, 3)
             .reshape(B_pad, T, F_pad)[:B, :, :F])
    h_fin = h_out[:B][None]
    c_fin = c_out[:B][None]
    return y_btf, (h_fin, c_fin)


def _reference_forward(x_btf, h0, c0, params):
    """Pure-JAX reference (matches PyTorch LSTM + Linear + tanh * input)."""
    w_ih, w_hh, b_ih, b_hh, w_out, b_out = params
    H = w_hh.shape[1]

    def step(carry, x_t):
        h, c = carry
        gates = x_t @ w_ih.T + h @ w_hh.T + b_ih + b_hh
        i = jax.nn.sigmoid(gates[:, 0 * H:1 * H])
        f = jax.nn.sigmoid(gates[:, 1 * H:2 * H])
        g = jnp.tanh(gates[:, 2 * H:3 * H])
        o = jax.nn.sigmoid(gates[:, 3 * H:4 * H])
        c_new = f * c + i * g
        h_new = o * jnp.tanh(c_new)
        y = jnp.tanh(h_new @ w_out.T + b_out) * x_t
        return (h_new, c_new), y

    x_tbf = jnp.transpose(x_btf, (1, 0, 2))
    (h_f, c_f), y_tbf = jax.lax.scan(step, (h0[0], c0[0]), x_tbf)
    return jnp.transpose(y_tbf, (1, 0, 2)), (h_f[None], c_f[None])


if __name__ == "__main__":
    # Small config consistent with Network88Tanh(hidden_size, n_layers=1,
    # bidirectional=False, n_features, rnn_type='LSTM').
    B, T, F, H = 2, 8, 16, 32

    key = jax.random.PRNGKey(0)
    ks = jax.random.split(key, 9)
    bound = 1.0 / jnp.sqrt(H)  # PyTorch default init range

    w_ih = jax.random.uniform(ks[0], (4 * H, F), jnp.float32, -bound, bound)
    w_hh = jax.random.uniform(ks[1], (4 * H, H), jnp.float32, -bound, bound)
    b_ih = jax.random.uniform(ks[2], (4 * H,), jnp.float32, -bound, bound)
    b_hh = jax.random.uniform(ks[3], (4 * H,), jnp.float32, -bound, bound)
    w_out = jax.random.uniform(ks[4], (F, H), jnp.float32, -bound, bound)
    b_out = jax.random.uniform(ks[5], (F,), jnp.float32, -bound, bound)
    params = (w_ih, w_hh, b_ih, b_hh, w_out, b_out)

    x = jax.random.normal(ks[6], (B, T, F), jnp.float32)
    h0 = jax.random.normal(ks[7], (1, B, H), jnp.float32)
    c0 = jax.random.normal(ks[8], (1, B, H), jnp.float32)

    out, (h_out, c_out) = network88tanh_forward(x, h0, c0, params)
    jax.block_until_ready((out, h_out, c_out))

    # Correctness check against a pure-JAX reference of the same math.
    ref_out, (ref_h, ref_c) = _reference_forward(x, h0, c0, params)
    assert jnp.allclose(out, ref_out, atol=1e-5, rtol=1e-5)
    assert jnp.allclose(h_out, ref_h, atol=1e-5, rtol=1e-5)
    assert jnp.allclose(c_out, ref_c, atol=1e-5, rtol=1e-5)

    print("KERNEL_OK")
</pallas_src>

<mosaic_0001>
module attributes {stable_mosaic.version = 11 : i64} {
  func.func @_lstm_net_kernel(%arg0: i32, %arg1: i32, %arg2: memref<64x128xf32, #tpu.memory_space<vmem>>, %arg3: memref<8x32xf32, #tpu.memory_space<vmem>>, %arg4: memref<8x32xf32, #tpu.memory_space<vmem>>, %arg5: memref<128x128xf32, #tpu.memory_space<vmem>>, %arg6: memref<32x128xf32, #tpu.memory_space<vmem>>, %arg7: memref<1x128xf32, #tpu.memory_space<vmem>>, %arg8: memref<32x128xf32, #tpu.memory_space<vmem>>, %arg9: memref<1x128xf32, #tpu.memory_space<vmem>>, %arg10: memref<64x128xf32, #tpu.memory_space<vmem>>, %arg11: memref<8x32xf32, #tpu.memory_space<vmem>>, %arg12: memref<8x32xf32, #tpu.memory_space<vmem>>, %arg13: memref<8x32xf32, #tpu.memory_space<vmem>>, %arg14: memref<8x32xf32, #tpu.memory_space<vmem>>, %arg15: memref<64x32xf32, #tpu.memory_space<vmem>>, %arg16: memref<64x128xf32, #tpu.memory_space<vmem>>) attributes {dimension_semantics = [#tpu.dimension_semantics<parallel>, #tpu.dimension_semantics<arbitrary>], iteration_bounds = array<i64: 1, 1>, scalar_prefetch = 0 : i64, scratch_operands = 4 : i64, tpu.core_type = #tpu.core_type<tc>, window_params = [{transform_indices = @transform_0, window_bounds = array<i64: 64, 128>}, {transform_indices = @transform_1, window_bounds = array<i64: 8, 32>}, {transform_indices = @transform_2, window_bounds = array<i64: 8, 32>}, {pipeline_mode = #tpu.pipeline_mode<synchronous>, transform_indices = @transform_3, window_bounds = array<i64: 128, 128>}, {pipeline_mode = #tpu.pipeline_mode<synchronous>, transform_indices = @transform_4, window_bounds = array<i64: 32, 128>}, {pipeline_mode = #tpu.pipeline_mode<synchronous>, transform_indices = @transform_5, window_bounds = array<i64: 1, 128>}, {pipeline_mode = #tpu.pipeline_mode<synchronous>, transform_indices = @transform_6, window_bounds = array<i64: 32, 128>}, {pipeline_mode = #tpu.pipeline_mode<synchronous>, transform_indices = @transform_7, window_bounds = array<i64: 1, 128>}, {transform_indices = @transform_8, window_bounds = array<i64: 64, 128>}, {transform_indices = @transform_9, window_bounds = array<i64: 8, 32>}, {transform_indices = @transform_10, window_bounds = array<i64: 8, 32>}]} {
    %c0_i32 = arith.constant 0 : i32
    %0 = arith.cmpi eq, %arg1, %c0_i32 : i32
    %1 = arith.extui %0 : i1 to i32
    %c0_i32_0 = arith.constant 0 : i32
    %2 = arith.cmpi ne, %1, %c0_i32_0 : i32
    scf.if %2 {
      %c0_72 = arith.constant 0 : index
      %c0_73 = arith.constant 0 : index
      %212 = vector.load %arg3[%c0_72, %c0_73] : memref<8x32xf32, #tpu.memory_space<vmem>>, vector<8x32xf32>
      %c0_74 = arith.constant 0 : index
      %c0_75 = arith.constant 0 : index
      %213 = vector.load %arg13[%c0_74, %c0_75] : memref<8x32xf32, #tpu.memory_space<vmem>>, vector<8x32xf32>
      tpu.vector_store %arg13[%c0_74, %c0_75], %212 {strides = array<i32>} : memref<8x32xf32, #tpu.memory_space<vmem>>, vector<8x32xf32>,
      %c0_76 = arith.constant 0 : index
      %c0_77 = arith.constant 0 : index
      %214 = vector.load %arg4[%c0_76, %c0_77] : memref<8x32xf32, #tpu.memory_space<vmem>>, vector<8x32xf32>
      %c0_78 = arith.constant 0 : index
      %c0_79 = arith.constant 0 : index
      %215 = vector.load %arg14[%c0_78, %c0_79] : memref<8x32xf32, #tpu.memory_space<vmem>>, vector<8x32xf32>
      tpu.vector_store %arg14[%c0_78, %c0_79], %214 {strides = array<i32>} : memref<8x32xf32, #tpu.memory_space<vmem>>, vector<8x32xf32>,
    } else {
    }
    %c0 = arith.constant 0 : index
    %c0_1 = arith.constant 0 : index
    %3 = vector.load %arg2[%c0, %c0_1] : memref<64x128xf32, #tpu.memory_space<vmem>>, vector<64x128xf32>
    %c0_2 = arith.constant 0 : index
    %c0_3 = arith.constant 0 : index
    %4 = vector.load %arg5[%c0_2, %c0_3] : memref<128x128xf32, #tpu.memory_space<vmem>>, vector<128x128xf32>
    %cst = arith.constant dense<0.000000e+00> : vector<64x128xf32>
    %5 = tpu.matmul %3, %4, %cst {dimension_numbers = #tpu.dot_dimension_numbers<[1], [0], [0], [1], [0, 0, 1, 1], [], []>} : vector<64x128xf32>, vector<128x128xf32>, vector<64x128xf32> -> vector<64x128xf32>
    %c0_4 = arith.constant 0 : index
    %c0_5 = arith.constant 0 : index
    %6 = vector.load %arg7[%c0_4, %c0_5] : memref<1x128xf32, #tpu.memory_space<vmem>>, vector<1x128xf32>
    %7 = vector.broadcast %6 : vector<1x128xf32> to vector<64x128xf32>
    %8 = arith.addf %5, %7 : vector<64x128xf32>
    %c0_6 = arith.constant 0 : index
    %c0_7 = arith.constant 0 : index
    %9 = vector.load %arg16[%c0_6, %c0_7] : memref<64x128xf32, #tpu.memory_space<vmem>>, vector<64x128xf32>
    tpu.vector_store %arg16[%c0_6, %c0_7], %8 {strides = array<i32>} : memref<64x128xf32, #tpu.memory_space<vmem>>, vector<64x128xf32>,
    %c0_8 = arith.constant 0 : index
    %c0_9 = arith.constant 0 : index
    %10 = vector.load %arg6[%c0_8, %c0_9] : memref<32x128xf32, #tpu.memory_space<vmem>>, vector<32x128xf32>
    %c0_10 = arith.constant 0 : index
    %c0_11 = arith.constant 0 : index
    %11 = vector.load %arg13[%c0_10, %c0_11] : memref<8x32xf32, #tpu.memory_space<vmem>>, vector<8x32xf32>
    %c0_12 = arith.constant 0 : index
    %c0_13 = arith.constant 0 : index
    %12 = vector.load %arg14[%c0_12, %c0_13] : memref<8x32xf32, #tpu.memory_space<vmem>>, vector<8x32xf32>
    %c0_i32_14 = arith.constant 0 : i32
    %c8_i32 = arith.constant 8 : i32
    %13 = arith.muli %c0_i32_14, %c8_i32 : i32
    %14 = tpu.assume_multiple %13, 8 : i32
    %15 = arith.index_cast %14 : i32 to index
    %c0_15 = arith.constant 0 : index
    %16 = vector.load %arg16[%15, %c0_15] : memref<64x128xf32, #tpu.memory_space<vmem>>, vector<8x128xf32>
    %cst_16 = arith.constant dense<0.000000e+00> : vector<8x128xf32>
    %17 = tpu.matmul %11, %10, %cst_16 {dimension_numbers = #tpu.dot_dimension_numbers<[1], [0], [0], [1], [0, 0, 1, 1], [], []>} : vector<8x32xf32>, vector<32x128xf32>, vector<8x128xf32> -> vector<8x128xf32>
    %18 = arith.addf %16, %17 : vector<8x128xf32>
    %19 = arith.negf %18 : vector<8x128xf32>
    %20 = math.exp %19 : vector<8x128xf32>
    %cst_17 = arith.constant 1.000000e+00 : f32
    %21 = vector.broadcast %cst_17 : f32 to vector<8x128xf32>
    %22 = arith.addf %21, %20 : vector<8x128xf32>
    %23 = arith.divf %21, %22 : vector<8x128xf32>
    %24 = vector.extract_strided_slice %23 {offsets = [0, 0], sizes = [8, 32], strides = [1, 1]} : vector<8x128xf32> to vector<8x32xf32>
    %25 = vector.extract_strided_slice %23 {offsets = [0, 32], sizes = [8, 32], strides = [1, 1]} : vector<8x128xf32> to vector<8x32xf32>
    %26 = vector.extract_strided_slice %23 {offsets = [0, 96], sizes = [8, 32], strides = [1, 1]} : vector<8x128xf32> to vector<8x32xf32>
    %27 = vector.extract_strided_slice %18 {offsets = [0, 64], sizes = [8, 32], strides = [1, 1]} : vector<8x128xf32> to vector<8x32xf32>
    %28 = math.tanh %27 : vector<8x32xf32>
    %29 = arith.mulf %25, %12 : vector<8x32xf32>
    %30 = arith.mulf %24, %28 : vector<8x32xf32>
    %31 = arith.addf %29, %30 : vector<8x32xf32>
    %32 = math.tanh %31 : vector<8x32xf32>
    %33 = arith.mulf %26, %32 : vector<8x32xf32>
    %34 = arith.index_cast %14 : i32 to index
    %c0_18 = arith.constant 0 : index
    %35 = vector.load %arg15[%34, %c0_18] : memref<64x32xf32, #tpu.memory_space<vmem>>, vector<8x32xf32>
    tpu.vector_store %arg15[%34, %c0_18], %33 {strides = array<i32>} : memref<64x32xf32, #tpu.memory_space<vmem>>, vector<8x32xf32>,
    %c1_i32 = arith.constant 1 : i32
    %c8_i32_19 = arith.constant 8 : i32
    %36 = arith.muli %c1_i32, %c8_i32_19 : i32
    %37 = tpu.assume_multiple %36, 8 : i32
    %38 = arith.index_cast %37 : i32 to index
    %c0_20 = arith.constant 0 : index
    %39 = vector.load %arg16[%38, %c0_20] : memref<64x128xf32, #tpu.memory_space<vmem>>, vector<8x128xf32>
    %cst_21 = arith.constant dense<0.000000e+00> : vector<8x128xf32>
    %40 = tpu.matmul %33, %10, %cst_21 {dimension_numbers = #tpu.dot_dimension_numbers<[1], [0], [0], [1], [0, 0, 1, 1], [], []>} : vector<8x32xf32>, vector<32x128xf32>, vector<8x128xf32> -> vector<8x128xf32>
    %41 = arith.addf %39, %40 : vector<8x128xf32>
    %42 = arith.negf %41 : vector<8x128xf32>
    %43 = math.exp %42 : vector<8x128xf32>
    %cst_22 = arith.constant 1.000000e+00 : f32
    %44 = vector.broadcast %cst_22 : f32 to vector<8x128xf32>
    %45 = arith.addf %44, %43 : vector<8x128xf32>
    %46 = arith.divf %44, %45 : vector<8x128xf32>
    %47 = vector.extract_strided_slice %46 {offsets = [0, 0], sizes = [8, 32], strides = [1, 1]} : vector<8x128xf32> to vector<8x32xf32>
    %48 = vector.extract_strided_slice %46 {offsets = [0, 32], sizes = [8, 32], strides = [1, 1]} : vector<8x128xf32> to vector<8x32xf32>
    %49 = vector.extract_strided_slice %46 {offsets = [0, 96], sizes = [8, 32], strides = [1, 1]} : vector<8x128xf32> to vector<8x32xf32>
    %50 = vector.extract_strided_slice %41 {offsets = [0, 64], sizes = [8, 32], strides = [1, 1]} : vector<8x128xf32> to vector<8x32xf32>
    %51 = math.tanh %50 : vector<8x32xf32>
    %52 = arith.mulf %48, %31 : vector<8x32xf32>
    %53 = arith.mulf %47, %51 : vector<8x32xf32>
    %54 = arith.addf %52, %53 : vector<8x32xf32>
    %55 = math.tanh %54 : vector<8x32xf32>
    %56 = arith.mulf %49, %55 : vector<8x32xf32>
    %57 = arith.index_cast %37 : i32 to index
    %c0_23 = arith.constant 0 : index
    %58 = vector.load %arg15[%57, %c0_23] : memref<64x32xf32, #tpu.memory_space<vmem>>, vector<8x32xf32>
    tpu.vector_store %arg15[%57, %c0_23], %56 {strides = array<i32>} : memref<64x32xf32, #tpu.memory_space<vmem>>, vector<8x32xf32>,
    %c2_i32 = arith.constant 2 : i32
    %c8_i32_24 = arith.constant 8 : i32
    %59 = arith.muli %c2_i32, %c8_i32_24 : i32
    %60 = tpu.assume_multiple %59, 8 : i32
    %61 = arith.index_cast %60 : i32 to index
    %c0_25 = arith.constant 0 : index
    %62 = vector.load %arg16[%61, %c0_25] : memref<64x128xf32, #tpu.memory_space<vmem>>, vector<8x128xf32>
    %cst_26 = arith.constant dense<0.000000e+00> : vector<8x128xf32>
    %63 = tpu.matmul %56, %10, %cst_26 {dimension_numbers = #tpu.dot_dimension_numbers<[1], [0], [0], [1], [0, 0, 1, 1], [], []>} : vector<8x32xf32>, vector<32x128xf32>, vector<8x128xf32> -> vector<8x128xf32>
    %64 = arith.addf %62, %63 : vector<8x128xf32>
    %65 = arith.negf %64 : vector<8x128xf32>
    %66 = math.exp %65 : vector<8x128xf32>
    %cst_27 = arith.constant 1.000000e+00 : f32
    %67 = vector.broadcast %cst_27 : f32 to vector<8x128xf32>
    %68 = arith.addf %67, %66 : vector<8x128xf32>
    %69 = arith.divf %67, %68 : vector<8x128xf32>
    %70 = vector.extract_strided_slice %69 {offsets = [0, 0], sizes = [8, 32], strides = [1, 1]} : vector<8x128xf32> to vector<8x32xf32>
    %71 = vector.extract_strided_slice %69 {offsets = [0, 32], sizes = [8, 32], strides = [1, 1]} : vector<8x128xf32> to vector<8x32xf32>
    %72 = vector.extract_strided_slice %69 {offsets = [0, 96], sizes = [8, 32], strides = [1, 1]} : vector<8x128xf32> to vector<8x32xf32>
    %73 = vector.extract_strided_slice %64 {offsets = [0, 64], sizes = [8, 32], strides = [1, 1]} : vector<8x128xf32> to vector<8x32xf32>
    %74 = math.tanh %73 : vector<8x32xf32>
    %75 = arith.mulf %71, %54 : vector<8x32xf32>
    %76 = arith.mulf %70, %74 : vector<8x32xf32>
    %77 = arith.addf %75, %76 : vector<8x32xf32>
    %78 = math.tanh %77 : vector<8x32xf32>
    %79 = arith.mulf %72, %78 : vector<8x32xf32>
    %80 = arith.index_cast %60 : i32 to index
    %c0_28 = arith.constant 0 : index
    %81 = vector.load %arg15[%80, %c0_28] : memref<64x32xf32, #tpu.memory_space<vmem>>, vector<8x32xf32>
    tpu.vector_store %arg15[%80, %c0_28], %79 {strides = array<i32>} : memref<64x32xf32, #tpu.memory_space<vmem>>, vector<8x32xf32>,
    %c3_i32 = arith.constant 3 : i32
    %c8_i32_29 = arith.constant 8 : i32
    %82 = arith.muli %c3_i32, %c8_i32_29 : i32
    %83 = tpu.assume_multiple %82, 8 : i32
    %84 = arith.index_cast %83 : i32 to index
    %c0_30 = arith.constant 0 : index
    %85 = vector.load %arg16[%84, %c0_30] : memref<64x128xf32, #tpu.memory_space<vmem>>, vector<8x128xf32>
    %cst_31 = arith.constant dense<0.000000e+00> : vector<8x128xf32>
    %86 = tpu.matmul %79, %10, %cst_31 {dimension_numbers = #tpu.dot_dimension_numbers<[1], [0], [0], [1], [0, 0, 1, 1], [], []>} : vector<8x32xf32>, vector<32x128xf32>, vector<8x128xf32> -> vector<8x128xf32>
    %87 = arith.addf %85, %86 : vector<8x128xf32>
    %88 = arith.negf %87 : vector<8x128xf32>
    %89 = math.exp %88 : vector<8x128xf32>
    %cst_32 = arith.constant 1.000000e+00 : f32
    %90 = vector.broadcast %cst_32 : f32 to vector<8x128xf32>
    %91 = arith.addf %90, %89 : vector<8x128xf32>
    %92 = arith.divf %90, %91 : vector<8x128xf32>
    %93 = vector.extract_strided_slice %92 {offsets = [0, 0], sizes = [8, 32], strides = [1, 1]} : vector<8x128xf32> to vector<8x32xf32>
    %94 = vector.extract_strided_slice %92 {offsets = [0, 32], sizes = [8, 32], strides = [1, 1]} : vector<8x128xf32> to vector<8x32xf32>
    %95 = vector.extract_strided_slice %92 {offsets = [0, 96], sizes = [8, 32], strides = [1, 1]} : vector<8x128xf32> to vector<8x32xf32>
    %96 = vector.extract_strided_slice %87 {offsets = [0, 64], sizes = [8, 32], strides = [1, 1]} : vector<8x128xf32> to vector<8x32xf32>
    %97 = math.tanh %96 : vector<8x32xf32>
    %98 = arith.mulf %94, %77 : vector<8x32xf32>
    %99 = arith.mulf %93, %97 : vector<8x32xf32>
    %100 = arith.addf %98, %99 : vector<8x32xf32>
    %101 = math.tanh %100 : vector<8x32xf32>
    %102 = arith.mulf %95, %101 : vector<8x32xf32>
    %103 = arith.index_cast %83 : i32 to index
    %c0_33 = arith.constant 0 : index
    %104 = vector.load %arg15[%103, %c0_33] : memref<64x32xf32, #tpu.memory_space<vmem>>, vector<8x32xf32>
    tpu.vector_store %arg15[%103, %c0_33], %102 {strides = array<i32>} : memref<64x32xf32, #tpu.memory_space<vmem>>, vector<8x32xf32>,
    %c4_i32 = arith.constant 4 : i32
    %c8_i32_34 = arith.constant 8 : i32
    %105 = arith.muli %c4_i32, %c8_i32_34 : i32
    %106 = tpu.assume_multiple %105, 8 : i32
    %107 = arith.index_cast %106 : i32 to index
    %c0_35 = arith.constant 0 : index
    %108 = vector.load %arg16[%107, %c0_35] : memref<64x128xf32, #tpu.memory_space<vmem>>, vector<8x128xf32>
    %cst_36 = arith.constant dense<0.000000e+00> : vector<8x128xf32>
    %109 = tpu.matmul %102, %10, %cst_36 {dimension_numbers = #tpu.dot_dimension_numbers<[1], [0], [0], [1], [0, 0, 1, 1], [], []>} : vector<8x32xf32>, vector<32x128xf32>, vector<8x128xf32> -> vector<8x128xf32>
    %110 = arith.addf %108, %109 : vector<8x128xf32>
    %111 = arith.negf %110 : vector<8x128xf32>
    %112 = math.exp %111 : vector<8x128xf32>
    %cst_37 = arith.constant 1.000000e+00 : f32
    %113 = vector.broadcast %cst_37 : f32 to vector<8x128xf32>
    %114 = arith.addf %113, %112 : vector<8x128xf32>
    %115 = arith.divf %113, %114 : vector<8x128xf32>
    %116 = vector.extract_strided_slice %115 {offsets = [0, 0], sizes = [8, 32], strides = [1, 1]} : vector<8x128xf32> to vector<8x32xf32>
    %117 = vector.extract_strided_slice %115 {offsets = [0, 32], sizes = [8, 32], strides = [1, 1]} : vector<8x128xf32> to vector<8x32xf32>
    %118 = vector.extract_strided_slice %115 {offsets = [0, 96], sizes = [8, 32], strides = [1, 1]} : vector<8x128xf32> to vector<8x32xf32>
    %119 = vector.extract_strided_slice %110 {offsets = [0, 64], sizes = [8, 32], strides = [1, 1]} : vector<8x128xf32> to vector<8x32xf32>
    %120 = math.tanh %119 : vector<8x32xf32>
    %121 = arith.mulf %117, %100 : vector<8x32xf32>
    %122 = arith.mulf %116, %120 : vector<8x32xf32>
    %123 = arith.addf %121, %122 : vector<8x32xf32>
    %124 = math.tanh %123 : vector<8x32xf32>
    %125 = arith.mulf %118, %124 : vector<8x32xf32>
    %126 = arith.index_cast %106 : i32 to index
    %c0_38 = arith.constant 0 : index
    %127 = vector.load %arg15[%126, %c0_38] : memref<64x32xf32, #tpu.memory_space<vmem>>, vector<8x32xf32>
    tpu.vector_store %arg15[%126, %c0_38], %125 {strides = array<i32>} : memref<64x32xf32, #tpu.memory_space<vmem>>, vector<8x32xf32>,
    %c5_i32 = arith.constant 5 : i32
    %c8_i32_39 = arith.constant 8 : i32
    %128 = arith.muli %c5_i32, %c8_i32_39 : i32
    %129 = tpu.assume_multiple %128, 8 : i32
    %130 = arith.index_cast %129 : i32 to index
    %c0_40 = arith.constant 0 : index
    %131 = vector.load %arg16[%130, %c0_40] : memref<64x128xf32, #tpu.memory_space<vmem>>, vector<8x128xf32>
    %cst_41 = arith.constant dense<0.000000e+00> : vector<8x128xf32>
    %132 = tpu.matmul %125, %10, %cst_41 {dimension_numbers = #tpu.dot_dimension_numbers<[1], [0], [0], [1], [0, 0, 1, 1], [], []>} : vector<8x32xf32>, vector<32x128xf32>, vector<8x128xf32> -> vector<8x128xf32>
    %133 = arith.addf %131, %132 : vector<8x128xf32>
    %134 = arith.negf %133 : vector<8x128xf32>
    %135 = math.exp %134 : vector<8x128xf32>
    %cst_42 = arith.constant 1.000000e+00 : f32
    %136 = vector.broadcast %cst_42 : f32 to vector<8x128xf32>
    %137 = arith.addf %136, %135 : vector<8x128xf32>
    %138 = arith.divf %136, %137 : vector<8x128xf32>
    %139 = vector.extract_strided_slice %138 {offsets = [0, 0], sizes = [8, 32], strides = [1, 1]} : vector<8x128xf32> to vector<8x32xf32>
    %140 = vector.extract_strided_slice %138 {offsets = [0, 32], sizes = [8, 32], strides = [1, 1]} : vector<8x128xf32> to vector<8x32xf32>
    %141 = vector.extract_strided_slice %138 {offsets = [0, 96], sizes = [8, 32], strides = [1, 1]} : vector<8x128xf32> to vector<8x32xf32>
    %142 = vector.extract_strided_slice %133 {offsets = [0, 64], sizes = [8, 32], strides = [1, 1]} : vector<8x128xf32> to vector<8x32xf32>
    %143 = math.tanh %142 : vector<8x32xf32>
    %144 = arith.mulf %140, %123 : vector<8x32xf32>
    %145 = arith.mulf %139, %143 : vector<8x32xf32>
    %146 = arith.addf %144, %145 : vector<8x32xf32>
    %147 = math.tanh %146 : vector<8x32xf32>
    %148 = arith.mulf %141, %147 : vector<8x32xf32>
    %149 = arith.index_cast %129 : i32 to index
    %c0_43 = arith.constant 0 : index
    %150 = vector.load %arg15[%149, %c0_43] : memref<64x32xf32, #tpu.memory_space<vmem>>, vector<8x32xf32>
    tpu.vector_store %arg15[%149, %c0_43], %148 {strides = array<i32>} : memref<64x32xf32, #tpu.memory_space<vmem>>, vector<8x32xf32>,
    %c6_i32 = arith.constant 6 : i32
    %c8_i32_44 = arith.constant 8 : i32
    %151 = arith.muli %c6_i32, %c8_i32_44 : i32
    %152 = tpu.assume_multiple %151, 8 : i32
    %153 = arith.index_cast %152 : i32 to index
    %c0_45 = arith.constant 0 : index
    %154 = vector.load %arg16[%153, %c0_45] : memref<64x128xf32, #tpu.memory_space<vmem>>, vector<8x128xf32>
    %cst_46 = arith.constant dense<0.000000e+00> : vector<8x128xf32>
    %155 = tpu.matmul %148, %10, %cst_46 {dimension_numbers = #tpu.dot_dimension_numbers<[1], [0], [0], [1], [0, 0, 1, 1], [], []>} : vector<8x32xf32>, vector<32x128xf32>, vector<8x128xf32> -> vector<8x128xf32>
    %156 = arith.addf %154, %155 : vector<8x128xf32>
    %157 = arith.negf %156 : vector<8x128xf32>
    %158 = math.exp %157 : vector<8x128xf32>
    %cst_47 = arith.constant 1.000000e+00 : f32
    %159 = vector.broadcast %cst_47 : f32 to vector<8x128xf32>
    %160 = arith.addf %159, %158 : vector<8x128xf32>
    %161 = arith.divf %159, %160 : vector<8x128xf32>
    %162 = vector.extract_strided_slice %161 {offsets = [0, 0], sizes = [8, 32], strides = [1, 1]} : vector<8x128xf32> to vector<8x32xf32>
    %163 = vector.extract_strided_slice %161 {offsets = [0, 32], sizes = [8, 32], strides = [1, 1]} : vector<8x128xf32> to vector<8x32xf32>
    %164 = vector.extract_strided_slice %161 {offsets = [0, 96], sizes = [8, 32], strides = [1, 1]} : vector<8x128xf32> to vector<8x32xf32>
    %165 = vector.extract_strided_slice %156 {offsets = [0, 64], sizes = [8, 32], strides = [1, 1]} : vector<8x128xf32> to vector<8x32xf32>
    %166 = math.tanh %165 : vector<8x32xf32>
    %167 = arith.mulf %163, %146 : vector<8x32xf32>
    %168 = arith.mulf %162, %166 : vector<8x32xf32>
    %169 = arith.addf %167, %168 : vector<8x32xf32>
    %170 = math.tanh %169 : vector<8x32xf32>
    %171 = arith.mulf %164, %170 : vector<8x32xf32>
    %172 = arith.index_cast %152 : i32 to index
    %c0_48 = arith.constant 0 : index
    %173 = vector.load %arg15[%172, %c0_48] : memref<64x32xf32, #tpu.memory_space<vmem>>, vector<8x32xf32>
    tpu.vector_store %arg15[%172, %c0_48], %171 {strides = array<i32>} : memref<64x32xf32, #tpu.memory_space<vmem>>, vector<8x32xf32>,
    %c7_i32 = arith.constant 7 : i32
    %c8_i32_49 = arith.constant 8 : i32
    %174 = arith.muli %c7_i32, %c8_i32_49 : i32
    %175 = tpu.assume_multiple %174, 8 : i32
    %176 = arith.index_cast %175 : i32 to index
    %c0_50 = arith.constant 0 : index
    %177 = vector.load %arg16[%176, %c0_50] : memref<64x128xf32, #tpu.memory_space<vmem>>, vector<8x128xf32>
    %cst_51 = arith.constant dense<0.000000e+00> : vector<8x128xf32>
    %178 = tpu.matmul %171, %10, %cst_51 {dimension_numbers = #tpu.dot_dimension_numbers<[1], [0], [0], [1], [0, 0, 1, 1], [], []>} : vector<8x32xf32>, vector<32x128xf32>, vector<8x128xf32> -> vector<8x128xf32>
    %179 = arith.addf %177, %178 : vector<8x128xf32>
    %180 = arith.negf %179 : vector<8x128xf32>
    %181 = math.exp %180 : vector<8x128xf32>
    %cst_52 = arith.constant 1.000000e+00 : f32
    %182 = vector.broadcast %cst_52 : f32 to vector<8x128xf32>
    %183 = arith.addf %182, %181 : vector<8x128xf32>
    %184 = arith.divf %182, %183 : vector<8x128xf32>
    %185 = vector.extract_strided_slice %184 {offsets = [0, 0], sizes = [8, 32], strides = [1, 1]} : vector<8x128xf32> to vector<8x32xf32>
    %186 = vector.extract_strided_slice %184 {offsets = [0, 32], sizes = [8, 32], strides = [1, 1]} : vector<8x128xf32> to vector<8x32xf32>
    %187 = vector.extract_strided_slice %184 {offsets = [0, 96], sizes = [8, 32], strides = [1, 1]} : vector<8x128xf32> to vector<8x32xf32>
    %188 = vector.extract_strided_slice %179 {offsets = [0, 64], sizes = [8, 32], strides = [1, 1]} : vector<8x128xf32> to vector<8x32xf32>
    %189 = math.tanh %188 : vector<8x32xf32>
    %190 = arith.mulf %186, %169 : vector<8x32xf32>
    %191 = arith.mulf %185, %189 : vector<8x32xf32>
    %192 = arith.addf %190, %191 : vector<8x32xf32>
    %193 = math.tanh %192 : vector<8x32xf32>
    %194 = arith.mulf %187, %193 : vector<8x32xf32>
    %195 = arith.index_cast %175 : i32 to index
    %c0_53 = arith.constant 0 : index
    %196 = vector.load %arg15[%195, %c0_53] : memref<64x32xf32, #tpu.memory_space<vmem>>, vector<8x32xf32>
    tpu.vector_store %arg15[%195, %c0_53], %194 {strides = array<i32>} : memref<64x32xf32, #tpu.memory_space<vmem>>, vector<8x32xf32>,
    %c8_i32_54 = arith.constant 8 : i32
    %c0_55 = arith.constant 0 : index
    %c0_56 = arith.constant 0 : index
    %197 = vector.load %arg13[%c0_55, %c0_56] : memref<8x32xf32, #tpu.memory_space<vmem>>, vector<8x32xf32>
    tpu.vector_store %arg13[%c0_55, %c0_56], %194 {strides = array<i32>} : memref<8x32xf32, #tpu.memory_space<vmem>>, vector<8x32xf32>,
    %c0_57 = arith.constant 0 : index
    %c0_58 = arith.constant 0 : index
    %198 = vector.load %arg14[%c0_57, %c0_58] : memref<8x32xf32, #tpu.memory_space<vmem>>, vector<8x32xf32>
    tpu.vector_store %arg14[%c0_57, %c0_58], %192 {strides = array<i32>} : memref<8x32xf32, #tpu.memory_space<vmem>>, vector<8x32xf32>,
    %c0_59 = arith.constant 0 : index
    %c0_60 = arith.constant 0 : index
    %199 = vector.load %arg15[%c0_59, %c0_60] : memref<64x32xf32, #tpu.memory_space<vmem>>, vector<64x32xf32>
    %c0_61 = arith.constant 0 : index
    %c0_62 = arith.constant 0 : index
    %200 = vector.load %arg8[%c0_61, %c0_62] : memref<32x128xf32, #tpu.memory_space<vmem>>, vector<32x128xf32>
    %cst_63 = arith.constant dense<0.000000e+00> : vector<64x128xf32>
    %201 = tpu.matmul %199, %200, %cst_63 {dimension_numbers = #tpu.dot_dimension_numbers<[1], [0], [0], [1], [0, 0, 1, 1], [], []>} : vector<64x32xf32>, vector<32x128xf32>, vector<64x128xf32> -> vector<64x128xf32>
    %c0_64 = arith.constant 0 : index
    %c0_65 = arith.constant 0 : index
    %202 = vector.load %arg9[%c0_64, %c0_65] : memref<1x128xf32, #tpu.memory_space<vmem>>, vector<1x128xf32>
    %203 = vector.broadcast %202 : vector<1x128xf32> to vector<64x128xf32>
    %204 = arith.addf %201, %203 : vector<64x128xf32>
    %205 = math.tanh %204 : vector<64x128xf32>
    %c0_66 = arith.constant 0 : index
    %c0_67 = arith.constant 0 : index
    %206 = vector.load %arg2[%c0_66, %c0_67] : memref<64x128xf32, #tpu.memory_space<vmem>>, vector<64x128xf32>
    %207 = arith.mulf %205, %206 : vector<64x128xf32>
    %c0_68 = arith.constant 0 : index
    %c0_69 = arith.constant 0 : index
    %208 = vector.load %arg10[%c0_68, %c0_69] : memref<64x128xf32, #tpu.memory_space<vmem>>, vector<64x128xf32>
    tpu.vector_store %arg10[%c0_68, %c0_69], %207 {strides = array<i32>} : memref<64x128xf32, #tpu.memory_space<vmem>>, vector<64x128xf32>,
    %c0_i32_70 = arith.constant 0 : i32
    %209 = arith.cmpi eq, %arg1, %c0_i32_70 : i32
    %210 = arith.extui %209 : i1 to i32
    %c0_i32_71 = arith.constant 0 : i32
    %211 = arith.cmpi ne, %210, %c0_i32_71 : i32
    scf.if %211 {
      %c0_72 = arith.constant 0 : index
      %c0_73 = arith.constant 0 : index
      %212 = vector.load %arg11[%c0_72, %c0_73] : memref<8x32xf32, #tpu.memory_space<vmem>>, vector<8x32xf32>
      tpu.vector_store %arg11[%c0_72, %c0_73], %194 {strides = array<i32>} : memref<8x32xf32, #tpu.memory_space<vmem>>, vector<8x32xf32>,
      %c0_74 = arith.constant 0 : index
      %c0_75 = arith.constant 0 : index
      %213 = vector.load %arg12[%c0_74, %c0_75] : memref<8x32xf32, #tpu.memory_space<vmem>>, vector<8x32xf32>
      tpu.vector_store %arg12[%c0_74, %c0_75], %192 {strides = array<i32>} : memref<8x32xf32, #tpu.memory_space<vmem>>, vector<8x32xf32>,
    } else {
    }
    return
  }
  func.func @transform_0(%arg0: i32, %arg1: i32) -> (i32, i32) {
    %c1_i32 = arith.constant 1 : i32
    %0 = arith.muli %arg0, %c1_i32 : i32
    %1 = arith.addi %0, %arg1 : i32
    %c0_i32 = arith.constant 0 : i32
    %c0_i32_0 = arith.constant 0 : i32
    return %1, %c0_i32 : i32, i32
  }
  func.func @transform_1(%arg0: i32, %arg1: i32) -> (i32, i32) {
    %c0_i32 = arith.constant 0 : i32
    %c0_i32_0 = arith.constant 0 : i32
    return %arg0, %c0_i32 : i32, i32
  }
  func.func @transform_2(%arg0: i32, %arg1: i32) -> (i32, i32) {
    %c0_i32 = arith.constant 0 : i32
    %c0_i32_0 = arith.constant 0 : i32
    return %arg0, %c0_i32 : i32, i32
  }
  func.func @transform_3(%arg0: i32, %arg1: i32) -> (i32, i32) {
    %c0_i32 = arith.constant 0 : i32
    %c0_i32_0 = arith.constant 0 : i32
    %c0_i32_1 = arith.constant 0 : i32
    return %c0_i32, %c0_i32_0 : i32, i32
  }
  func.func @transform_4(%arg0: i32, %arg1: i32) -> (i32, i32) {
    %c0_i32 = arith.constant 0 : i32
    %c0_i32_0 = arith.constant 0 : i32
    %c0_i32_1 = arith.constant 0 : i32
    return %c0_i32, %c0_i32_0 : i32, i32
  }
  func.func @transform_5(%arg0: i32, %arg1: i32) -> (i32, i32) {
    %c0_i32 = arith.constant 0 : i32
    %c0_i32_0 = arith.constant 0 : i32
    %c0_i32_1 = arith.constant 0 : i32
    return %c0_i32, %c0_i32_0 : i32, i32
  }
  func.func @transform_6(%arg0: i32, %arg1: i32) -> (i32, i32) {
    %c0_i32 = arith.constant 0 : i32
    %c0_i32_0 = arith.constant 0 : i32
    %c0_i32_1 = arith.constant 0 : i32
    return %c0_i32, %c0_i32_0 : i32, i32
  }
  func.func @transform_7(%arg0: i32, %arg1: i32) -> (i32, i32) {
    %c0_i32 = arith.constant 0 : i32
    %c0_i32_0 = arith.constant 0 : i32
    %c0_i32_1 = arith.constant 0 : i32
    return %c0_i32, %c0_i32_0 : i32, i32
  }
  func.func @transform_8(%arg0: i32, %arg1: i32) -> (i32, i32) {
    %c1_i32 = arith.constant 1 : i32
    %0 = arith.muli %arg0, %c1_i32 : i32
    %1 = arith.addi %0, %arg1 : i32
    %c0_i32 = arith.constant 0 : i32
    %c0_i32_0 = arith.constant 0 : i32
    return %1, %c0_i32 : i32, i32
  }
  func.func @transform_9(%arg0: i32, %arg1: i32) -> (i32, i32) {
    %c0_i32 = arith.constant 0 : i32
    %c0_i32_0 = arith.constant 0 : i32
    return %arg0, %c0_i32 : i32, i32
  }
  func.func @transform_10(%arg0: i32, %arg1: i32) -> (i32, i32) {
    %c0_i32 = arith.constant 0 : i32
    %c0_i32_0 = arith.constant 0 : i32
    return %arg0, %c0_i32 : i32, i32
  }
}

</mosaic_0001>

<bundles_post_ra>
// kernel: tpu_custom_call.1
= control target key start
LH: loop header
LB: loop body
LE: loop exit
PB: predicated region body
PF: predicated region fallthrough
CT: control target
= control target key end

     0   :  { %16 = vsyncpa [#allocation7], 0  ;;  %s2394_s0 = inlined_call_operand.hbm [shape: f32[64,128], index: 0, kind: input, shape index: {}]   ;;  %s2395_s1 = inlined_call_operand.hbm [shape: f32[8,32], index: 1, kind: input, shape index: {}]   ;;  %s2396_s2 = inlined_call_operand.hbm [shape: f32[8,32], index: 2, kind: input, shape index: {}]   ;;  %s2397_s3 = inlined_call_operand.hbm [shape: f32[128,128], index: 3, kind: input, shape index: {}]   ;;  %s2398_s4 = inlined_call_operand.hbm [shape: f32[32,128], index: 4, kind: input, shape index: {}]   ;;  %s2399_s5 = inlined_call_operand.vmem [shape: f32[1,128], index: 5, kind: input, shape index: {}]   ;;  %s2400_s6 = inlined_call_operand.hbm [shape: f32[32,128], index: 6, kind: input, shape index: {}]   ;;  %s2401_s7 = inlined_call_operand.vmem [shape: f32[1,128], index: 7, kind: input, shape index: {}]   ;;  %s2402_s8 = inlined_call_operand.hbm [shape: f32[64,128], index: 8, kind: output, shape index: {0}]   ;;  %s2403_s9 = inlined_call_operand.hbm [shape: f32[8,32], index: 9, kind: output, shape index: {1}]   ;;  %s2404_s10 = inlined_call_operand.hbm [shape: f32[8,32], index: 10, kind: output, shape index: {2}]  }
   0x1   :  { %17 = vsyncpa [#allocation10], 0 }
   0x2   :  { %18 = vsyncpa [#allocation13], 0 }
   0x3   :  { %19 = vsyncpa [#allocation16], 0 }
   0x4   :  { %20 = vsyncpa [#allocation8], 0 }
   0x5   :  { %21 = vsyncpa [#allocation19], 0  ;;  %s2014_s13 = smov [#allocation9]   ;;  %s1804_s17 = scalar_lea.hbm %s2395_s1, 128 }
   0x6   :  { %s44_s14 = sshll.u32 %s2014_s13, 4  ;;  %p1805_p0 = scmp.ne.s32.totalorder %s2395_s1, %s1804_s17  ;;  %s45_s14 = int_to_ptr.vmem [resolvable:$true] %s44_s14 }
   0x7   :  { %p1808_p1 = scmp.lt.u32.totalorder %s1804_s17, %s2395_s1 }
   0x9   :  { %p1810_p2 = pnand %p1808_p1, %p1805_p0 }
   0xb   :  { %1813 = shalt.err (!%p1810_p2)
}
   0xc   :  { %s1814_s22 = scalar_lea.vmem %s45_s14, 128  ;;  %p1819_p4 = scmp.lt.s32.totalorder %s45_s14, %s45_s14 }
   0xd   :  { %p1815_p3 = scmp.ne.s32.totalorder %s45_s14, %s1814_s22  ;;  %p1820_p5 = scmp.lt.s32.totalorder %s1814_s22, %s1814_s22 }
   0xf   :  { %p1821_p6 = por %p1820_p5, %p1819_p4 }
  0x11   :  { %p1822_p7 = pnand %p1821_p6, %p1815_p3 }
  0x13   :  { %1825 = shalt.err (!%p1822_p7)
}
  0x14   :  { %47 = dma.hbm_to_vmem [thread:$0]  %s2395_s1, 128, %s45_s14, [#allocation10]  }
  0x15   :  { %s2015_s25 = smov [#allocation12]   ;;  %s2016_s27 = smov [#allocation6]  }
  0x16   :  { %s63_s26 = sshll.u32 %s2015_s25, 4  ;;  %s31_s28 = sshll.u32 %s2016_s27, 4  ;;  %s64_s26 = int_to_ptr.vmem [resolvable:$true] %s63_s26  ;;  %s32_s28 = int_to_ptr.vmem [resolvable:$true] %s31_s28 }
  0x17   :  { %s1826_s11 = scalar_lea.hbm %s2397_s3, 2048 }
  0x18   :  { %p1827_p8 = scmp.ne.s32.totalorder %s2397_s3, %s1826_s11  ;;  %p1830_p9 = scmp.lt.u32.totalorder %s1826_s11, %s2397_s3 }
  0x1a   :  { %p1832_p10 = pnand %p1830_p9, %p1827_p8 }
  0x1c   :  { %1835 = shalt.err (!%p1832_p10)
}
  0x1d   :  { %s1836_s1 = scalar_lea.vmem %s64_s26, 2048  ;;  %p1841_p12 = scmp.lt.s32.totalorder %s64_s26, %s64_s26 }
  0x1e   :  { %p1837_p11 = scmp.ne.s32.totalorder %s64_s26, %s1836_s1  ;;  %p1842_p13 = scmp.lt.s32.totalorder %s1836_s1, %s1836_s1 }
  0x20   :  { %p1843_p0 = por %p1842_p13, %p1841_p12 }
  0x22   :  { %p1844_p1 = pnand %p1843_p0, %p1837_p11 }
  0x24   :  { %1847 = shalt.err (!%p1844_p1)
}
  0x25   :  { %s2017_s14 = smov 128   ;;  %s2018_s17 = smov 8  }
  0x26   :  { %69 = dma.hbm_to_vmem [thread:$0]  %s2397_s3, 2048, %s64_s26, [#allocation13], %s2017_s14, %s2017_s14, %s2018_s17  }
  0x27   :  { %s1848_s22 = scalar_lea.hbm %s2394_s0, 1024 }
  0x28   :  { %p1849_p2 = scmp.ne.s32.totalorder %s2394_s0, %s1848_s22  ;;  %p1852_p3 = scmp.lt.u32.totalorder %s1848_s22, %s2394_s0 }
  0x2a   :  { %p1854_p4 = pnand %p1852_p3, %p1849_p2 }
  0x2c   :  { %1857 = shalt.err (!%p1854_p4)
}
  0x2d   :  { %s1858_s29 = scalar_lea.vmem %s32_s28, 1024  ;;  %p1863_p6 = scmp.lt.s32.totalorder %s32_s28, %s32_s28 }
  0x2e   :  { %p1859_p5 = scmp.ne.s32.totalorder %s32_s28, %s1858_s29  ;;  %p1864_p7 = scmp.lt.s32.totalorder %s1858_s29, %s1858_s29 }
  0x30   :  { %p1865_p8 = por %p1864_p7, %p1863_p6 }
  0x32   :  { %p1866_p9 = pnand %p1865_p8, %p1859_p5 }
  0x34   :  { %1869 = shalt.err (!%p1866_p9)
}
  0x35   :  { %37 = dma.hbm_to_vmem [thread:$0]  %s2394_s0, 1024, %s32_s28, [#allocation7], %s2017_s14, %s2017_s14, %s2018_s17  }
  0x36   :  { %s2019_s30 = smov [#allocation11]   ;;  %s2020_s12 = smov [#allocation14]  }
  0x37   :  { %s54_s11 = sshll.u32 %s2019_s30, 4  ;;  %s75_s13 = sshll.u32 %s2020_s12, 4  ;;  %s55_s11 = int_to_ptr.vmem [resolvable:$true] %s54_s11  ;;  %s76_s13 = int_to_ptr.vmem [resolvable:$true] %s75_s13 }
  0x38   :  { %s1870_s1 = scalar_lea.hbm %s2396_s2, 128 }
  0x39   :  { %p1871_p10 = scmp.ne.s32.totalorder %s2396_s2, %s1870_s1  ;;  %p1874_p11 = scmp.lt.u32.totalorder %s1870_s1, %s2396_s2 }
  0x3b   :  { %p1876_p12 = pnand %p1874_p11, %p1871_p10 }
  0x3d   :  { %1879 = shalt.err (!%p1876_p12)
}
  0x3e   :  { %s1880_s0 = scalar_lea.vmem %s55_s11, 128  ;;  %p1885_p0 = scmp.lt.s32.totalorder %s55_s11, %s55_s11 }
  0x3f   :  { %p1881_p13 = scmp.ne.s32.totalorder %s55_s11, %s1880_s0  ;;  %p1886_p1 = scmp.lt.s32.totalorder %s1880_s0, %s1880_s0 }
  0x41   :  { %p1887_p2 = por %p1886_p1, %p1885_p0 }
  0x43   :  { %p1888_p3 = pnand %p1887_p2, %p1881_p13 }
  0x45   :  { %1891 = shalt.err (!%p1888_p3)
}
  0x46   :  { %57 = dma.hbm_to_vmem [thread:$0]  %s2396_s2, 128, %s55_s11, [#allocation10]  }
  0x47   :  { %s1892_s25 = scalar_lea.hbm %s2398_s4, 512 }
  0x48   :  { %p1893_p4 = scmp.ne.s32.totalorder %s2398_s4, %s1892_s25  ;;  %p1896_p5 = scmp.lt.u32.totalorder %s1892_s25, %s2398_s4 }
  0x4a   :  { %p1898_p6 = pnand %p1896_p5, %p1893_p4 }
  0x4c   :  { %1901 = shalt.err (!%p1898_p6)
}
  0x4d   :  { %s1902_s30 = scalar_lea.vmem %s76_s13, 512  ;;  %p1907_p8 = scmp.lt.s32.totalorder %s76_s13, %s76_s13 }
  0x4e   :  { %p1903_p7 = scmp.ne.s32.totalorder %s76_s13, %s1902_s30  ;;  %p1908_p9 = scmp.lt.s32.totalorder %s1902_s30, %s1902_s30 }
  0x50   :  { %p1909_p10 = por %p1908_p9, %p1907_p8 }
  0x52   :  { %p1910_p11 = pnand %p1909_p10, %p1903_p7 }
  0x54   :  { %1913 = shalt.err (!%p1910_p11)
}
  0x55   :  { %81 = dma.hbm_to_vmem [thread:$0]  %s2398_s4, 512, %s76_s13, [#allocation13], %s2017_s14, %s2017_s14, %s2018_s17  }
  0x56   :  { %s2021_s12 = smov [#allocation15]   ;;  %s1914_s18 = scalar_lea.hbm %s2400_s6, 512 }
  0x57   :  { %s89_s15 = sshll.u32 %s2021_s12, 4  ;;  %p1915_p12 = scmp.ne.s32.totalorder %s2400_s6, %s1914_s18  ;;  %s90_s15 = int_to_ptr.vmem [resolvable:$true] %s89_s15 }
  0x58   :  { %p1918_p13 = scmp.lt.u32.totalorder %s1914_s18, %s2400_s6 }
  0x5a   :  { %p1920_p0 = pnand %p1918_p13, %p1915_p12 }
  0x5c   :  { %1923 = shalt.err (!%p1920_p0)
}
  0x5d   :  { %s1924_s28 = scalar_lea.vmem %s90_s15, 512  ;;  %p1929_p2 = scmp.lt.s32.totalorder %s90_s15, %s90_s15 }
  0x5e   :  { %p1925_p1 = scmp.ne.s32.totalorder %s90_s15, %s1924_s28  ;;  %p1930_p3 = scmp.lt.s32.totalorder %s1924_s28, %s1924_s28 }
  0x60   :  { %p1931_p4 = por %p1930_p3, %p1929_p2 }
  0x62   :  { %p1932_p5 = pnand %p1931_p4, %p1925_p1 }
  0x64   :  { %1935 = shalt.err (!%p1932_p5)
}
  0x65   :  { %95 = dma.hbm_to_vmem [thread:$0]  %s2400_s6, 512, %s90_s15, [#allocation16], %s2017_s14, %s2017_s14, %s2018_s17  }
  0x66   :  { %2002 = dma.done.wait [#allocation7], 1024  }
  0x67   :  { %2003 = vsyncadd [#allocation7], 4294966272 }
  0x68   :  { %2004 = dma.done.wait [#allocation10], 256  }
  0x69   :  { %2005 = vsyncadd [#allocation10], 4294967040 }
  0x6a   :  { %2006 = dma.done.wait [#allocation13], 2560  }
  0x6b   :  { %2007 = vsyncadd [#allocation13], 4294964736 }
  0x6c   :  { %2008 = dma.done.wait [#allocation16], 512  }
  0x6d   :  { %2009 = vsyncadd [#allocation16], 4294966784  ;;  %v2022_v0 = vmov 0.0|0.0   ;;  %vm2023_vm0 = vmmov 0   ;;  %v2024_v1 = vmov 0.0   ;;  %v137_v2 = vld [vmem:[#allocation12] sm:$0xff] }
  0x6e   :  { %1657 = vmatprep.subr.bf16.mxu1 %v2022_v0  ;;  %1530 = vmatprep.mubr.msk.f32.mxu1 %vm2023_vm0, %v2024_v1  ;;  %v138_v3 = vld [vmem:[#allocation12 + $0x8] sm:$0xff]  ;;  %v139_v4 = vld [vmem:[#allocation12 + $0x10] sm:$0xff]  ;;  %v140_v6 = vld [vmem:[#allocation12 + $0x18] sm:$0xff]  ;;  %vm125_vm1 = vcmask 261120   ;;  %s2026_s23 = smov 32   ;;  %s2028_s27 = smov [#allocation18]  }
  0x6f   :  { %v1619_v5 = vpack.c.bf16 %v138_v3, %v137_v2  ;;  %v1623_v7 = vpack.c.bf16 %v140_v6, %v139_v4  ;;  %v141_v8 = vld [vmem:[#allocation12 + $0x20] sm:$0xff]  ;;  %v142_v9 = vld [vmem:[#allocation12 + $0x28] sm:$0xff]  ;;  %v143_v11 = vld [vmem:[#allocation12 + $0x30] sm:$0xff]  ;;  %s1336_s29 = sshll.u32 %s2028_s27, 4  ;;  %s1337_s29 = int_to_ptr.vmem [resolvable:$true] %s1336_s29 }
  0x70   :  { %v1627_v10 = vpack.c.bf16 %v142_v9, %v141_v8  ;;  %v2173_v12 = vld [vmem:[#allocation6] sm:$0xff]  ;;  %v144_v13 = vld [vmem:[#allocation12 + $0x38] sm:$0xff]  ;;  %v273_v14 = vld [vmem:[#allocation14] sm:$0xff]  ;;  %s1936_s3 = scalar_lea.vmem %s1337_s29, 128  ;;  %p1941_p7 = scmp.lt.s32.totalorder %s1337_s29, %s1337_s29 }
  0x71   :  { %1620 = vmatprep.subr.bf16.mxu0 %v1619_v5  ;;  %1499 = vmatprep.mubr.f32.mxu0 %v2173_v12  ;;  %v274_v15 = vld [vmem:[#allocation14 + $0x8] sm:$0xff]  ;;  %v275_v17 = vld [vmem:[#allocation14 + $0x10] sm:$0xff]  ;;  %v276_v18 = vld [vmem:[#allocation14 + $0x18] sm:$0xff]  ;;  %v1631_v19 = vpack.c.bf16 %v144_v13, %v143_v11  ;;  %p1937_p6 = scmp.ne.s32.totalorder %s1337_s29, %s1936_s3  ;;  %p1942_p8 = scmp.lt.s32.totalorder %s1936_s3, %s1936_s3 }
  0x72   :  { %1622 = vmatpush3.bf16.msra.mxu0 %v1619_v5  ;;  %v2176_v16 = vpack.c.bf16 %v274_v15, %v273_v14  ;;  %v124_v20 = vld [vmem:[#allocation9] sm:$0xff]  ;;  %v145_v21 = vld [vmem:[#allocation12 + $0x40] sm:$0xff]  ;;  %v146_v22 = vld [vmem:[#allocation12 + $0x48] sm:$0xff]  ;;  %v2181_v23 = vpack.c.bf16 %v276_v18, %v275_v17 }
  0x73   :  { %1624 = vmatprep.subr.bf16.mxu0 %v1623_v7  ;;  %126 = vst.msk [vmem:[#allocation2] sm:$0xff] %vm125_vm1, %v124_v20  ;;  %v1635_v24 = vpack.c.bf16 %v146_v22, %v145_v21  ;;  %v147_v25 = vld [vmem:[#allocation12 + $0x50] sm:$0xff]  ;;  %v148_v26 = vld [vmem:[#allocation12 + $0x58] sm:$0xff]  ;;  %v149_v28 = vld [vmem:[#allocation12 + $0x60] sm:$0xff]  ;;  %p1943_p9 = por %p1942_p8, %p1941_p7 }
  0x74   :  { %1659 = vmatpush3.bf16.msra.mxu1 %v2176_v16  ;;  %v1639_v27 = vpack.c.bf16 %v148_v26, %v147_v25  ;;  %v150_v29 = vld [vmem:[#allocation12 + $0x68] sm:$0xff]  ;;  %v151_v31 = vld [vmem:[#allocation12 + $0x70] sm:$0xff]  ;;  %v152_v32 = vld [vmem:[#allocation12 + $0x78] sm:$0xff] }
  0x75   :  { %1660 = vmatprep.subr.bf16.mxu1 %v2022_v0  ;;  %v1643_v30 = vpack.c.bf16 %v150_v29, %v149_v28  ;;  %v1647_v33 = vpack.c.bf16 %v152_v32, %v151_v31  ;;  %v2185_v34 = vld [vmem:[#allocation6 + $0x8] sm:$0xff]  ;;  %v2188_v35 = vld [vmem:[#allocation6 + $0x10] sm:$0xff]  ;;  %v2193_v36 = vld [vmem:[#allocation6 + $0x18] sm:$0xff]  ;;  %p1944_p10 = pnand %p1943_p9, %p1937_p6 }
  0x76   :  { %1626 = vmatpush3.bf16.msra.mxu0 %v1623_v7  ;;  %v2195_v37 = vld [vmem:[#allocation6 + $0x20] sm:$0xff]  ;;  %v2200_v38 = vld [vmem:[#allocation6 + $0x28] sm:$0xff]  ;;  %v2203_v39 = vld [vmem:[#allocation6 + $0x30] sm:$0xff] }
  0x77   :  { %1628 = vmatprep.subr.bf16.mxu0 %v1627_v10  ;;  %v2208_v40 = vld [vmem:[#allocation6 + $0x38] sm:$0xff]  ;;  %v127_v42 = vld [vmem:[#allocation11] sm:$0xff]  ;;  %v1365_v43 = vld [vmem:[%s2399_s5] ss:$0 sm:$0xff]  ;;  %s2025_s5 = smov 64  }
  0x78   :  { %1662 = vmatpush3.bf16.msra.mxu1 %v2181_v23  ;;  %128 = vst.msk [vmem:[#allocation3] sm:$0xff] %vm125_vm1, %v127_v42 }
  0x79   :  { %1663 = vmatprep.subr.bf16.mxu1 %v2022_v0 }
  0x7a   :  { %1630 = vmatpush3.bf16.msra.mxu0 %v1627_v10  ;;  %v277_v41 = vld [vmem:[#allocation2] sm:$0xff] }
  0x7b   :  { %1632 = vmatprep.subr.bf16.mxu0 %v1631_v19 }
  0x7e   :  { %1634 = vmatpush3.bf16.msra.mxu0 %v1631_v19 }
  0x7f   :  { %1636 = vmatprep.subr.bf16.mxu0 %v1635_v24  ;;  %v278_v2 = vld [vmem:[#allocation3] sm:$0xff] }
  0x82   :  { %1638 = vmatpush3.bf16.msra.mxu0 %v1635_v24 }
  0x83   :  { %1640 = vmatprep.subr.bf16.mxu0 %v1639_v27 }
  0x86   :  { %1642 = vmatpush3.bf16.msra.mxu0 %v1639_v27 }
  0x87   :  { %1644 = vmatprep.subr.bf16.mxu0 %v1643_v30 }
  0x8a   :  { %1646 = vmatpush3.bf16.msra.mxu0 %v1643_v30 }
  0x8b   :  { %1648 = vmatprep.subr.bf16.mxu0 %v1647_v33 }
  0x8e   :  { %1650 = vmatpush3.bf16.msra.mxu0 %v1647_v33 }
  0x8f   :  { %1651 = vmatprep.subr.bf16.mxu0 %v2022_v0 }
  0x91   :  { %1500 = vmatmul.mubr.f32.vlgmr.msra.gmra.mrb[0].mxu0 %v2185_v34 }
  0x92   :  { %1653 = vmatpush3.bf16.msra.mxu0 %v2176_v16  ;;  %1502 = vmatprep.mubr.f32.mxu0 %v2188_v35 }
  0x93   :  { %1654 = vmatprep.subr.bf16.mxu0 %v2022_v0 }
  0x95   :  { %1503 = vmatmul.mubr.f32.gmra.mrb[2].mxu0 %v2193_v36 }
  0x96   :  { %1505 = vmatprep.mubr.f32.mxu0 %v2195_v37  ;;  %1656 = vmatpush3.bf16.msra.mxu0 %v2181_v23 }
  0x97   :  { %1681 = vmatprep.subr.bf16.mxu0 %v2022_v0 }
  0x99   :  { %1506 = vmatmul.mubr.f32.gmra.mrb[4].mxu0 %v2200_v38 }
  0x9a   :  { %1508 = vmatprep.mubr.f32.mxu0 %v2203_v39 }
  0x9d   :  { %1509 = vmatmul.mubr.f32.gmra.mrb[6].mxu0 %v2208_v40 }
  0x9e   :  { %1519 = vmatprep.mubr.msk.f32.mxu0 %vm2023_vm0, %v2024_v1 }
  0xa1   :  { %1520 = vmatmul.mubr.msk.f32.vlgmr.msra.gmra.mrb[8].mxu0 %vm125_vm1, %v277_v41 }
  0xa2   :  { %1683 = vmatpush3.bf16.msra.mxu0 %v2176_v16  ;;  %1574 = vmatprep.mubr.msk.f32.mxu0 %vm2023_vm0, %v2024_v1 }
  0xa3   :  { %1684 = vmatprep.subr.bf16.mxu0 %v2022_v0 }
  0xa6   :  { %1686 = vmatpush3.bf16.msra.mxu0 %v2181_v23 }
  0xa7   :  { %1693 = vmatprep.subr.bf16.mxu0 %v2022_v0 }
 0x164   :  { %v1501_v44 = vpop.f32.mrb[0].mxu0 }
 0x165   :  { %v232_v45 = vadd.f32 %v1501_v44, %v1365_v43  ;;  %v226_v46 = vpop.f32.mrb[1].mxu0 }
 0x166   :  { %v227_v59 = vadd.f32 %v1365_v43, %v226_v46 }
 0x168   :  { %v1504_v47 = vpop.f32.mrb[2].mxu0 }
 0x169   :  { %v2224_v48 = vadd.f32 %v1504_v47, %v1365_v43  ;;  %v236_v49 = vpop.f32.mrb[3].mxu0 }
 0x16a   :  { %v2226_v50 = vadd.f32 %v1365_v43, %v236_v49 }
 0x16c   :  { %v1507_v51 = vpop.f32.mrb[4].mxu0 }
 0x16d   :  { %v2228_v52 = vadd.f32 %v1507_v51, %v1365_v43  ;;  %v246_v53 = vpop.f32.mrb[5].mxu0 }
 0x16e   :  { %v2230_v54 = vadd.f32 %v1365_v43, %v246_v53 }
 0x170   :  { %v1510_v55 = vpop.f32.mrb[6].mxu0 }
 0x171   :  { %v2232_v56 = vadd.f32 %v1510_v55, %v1365_v43  ;;  %v256_v57 = vpop.f32.mrb[7].mxu0 }
 0x172   :  { %v2234_v58 = vadd.f32 %v1365_v43, %v256_v57 }
 0x174   :  { %v350_v60 = vpop.f32.mrb[8].mxu0 }
 0x175   :  { %v354_v61 = vadd.f32 %v350_v60, %v227_v59  ;;  %v1521_v62 = vpop.f32.mrb[9].mxu0 }
 0x177   :  { %1724 = vtanh.f32 %v354_v61  ;;  %v1367_v3 = vmul.f32 -1.442695, %v354_v61 }
 0x179   :  { %1726 = vpow2.f32 %v1367_v3 }
 0x181   :  { %v1725_v63 = vpop.eup %1724 }
 0x182   :  { %368 = vrot.lane.b32.xlu0 %v1725_v63, %s2025_s5 }
 0x183   :  { %v1727_v4 = vpop.eup %1726 }
 0x184   :  { %v358_v5 = vadd.f32 1.0, %v1727_v4 }
 0x186   :  { %363 = vrot.lane.b32.xlu0 %v278_v2, %s2026_s23  ;;  %1728 = vrcp.f32 %v358_v5 }
 0x190   :  { %v1729_v6 = vpop.eup %1728 }
 0x1f4   :  { %v369_v7 = vpop.permute.xlu0 %368 }
 0x1f5   :  { %v371_v8 = vmul.f32 %v1729_v6, %v369_v7 }
 0x1f7   :  { %373 = vrot.lane.b32.xlu1 %v371_v8, %s2026_s23 }
 0x1f8   :  { %v364_v9 = vpop.permute.xlu0 %363 }
 0x1f9   :  { %v366_v10 = vmul.f32 %v1729_v6, %v364_v9 }
 0x269   :  { %v374_v11 = vpop.permute.xlu1 %373 }
 0x26a   :  { %v376_v13 = vadd.f32 %v374_v11, %v366_v10 }
 0x26c   :  { %1730 = vtanh.f32 %v376_v13 }
 0x276   :  { %v1731_v14 = vpop.eup %1730 }
 0x277   :  { %379 = vrot.lane.b32.xlu1 %v1731_v14, %s2025_s5 }
 0x2e9   :  { %v380_v15 = vpop.permute.xlu1 %379 }
 0x2ea   :  { %v382_v17 = vmul.f32 %v1729_v6, %v380_v15 }
 0x2ec   :  { %384 = vrot.lane.b32.xlu0 %v382_v17, %s2026_s23 }
 0x35e   :  { %v385_v18 = vpop.permute.xlu0 %384 }
 0x35f   :  { %387 = vst.msk [vmem:[#allocation4] sm:$0xff] %vm125_vm1, %v385_v18  ;;  %1531 = vmatmul.mubr.msk.f32.vlgmr.msra.gmra.mrb[0].mxu1 %vm125_vm1, %v385_v18 }
 0x360   :  { %1665 = vmatpush3.bf16.msra.mxu1 %v2176_v16  ;;  %1541 = vmatprep.mubr.msk.f32.mxu1 %vm2023_vm0, %v2024_v1 }
 0x361   :  { %1666 = vmatprep.subr.bf16.mxu1 %v2022_v0 }
 0x364   :  { %1668 = vmatpush3.bf16.msra.mxu1 %v2181_v23 }
 0x365   :  { %1669 = vmatprep.subr.bf16.mxu1 %v2022_v0 }
 0x432   :  { %v458_v19 = vpop.f32.mrb[0].mxu1 }
 0x433   :  { %v462_v20 = vadd.f32 %v458_v19, %v232_v45  ;;  %v1532_v21 = vpop.f32.mrb[1].mxu1 }
 0x435   :  { %1732 = vtanh.f32 %v462_v20  ;;  %v1369_v24 = vmul.f32 -1.442695, %v462_v20 }
 0x437   :  { %1734 = vpow2.f32 %v1369_v24 }
 0x43f   :  { %v1733_v22 = vpop.eup %1732 }
 0x440   :  { %472 = vrot.lane.b32.xlu1 %v1733_v22, %s2025_s5 }
 0x441   :  { %v1735_v25 = vpop.eup %1734 }
 0x442   :  { %v466_v26 = vadd.f32 1.0, %v1735_v25 }
 0x444   :  { %1736 = vrcp.f32 %v466_v26 }
 0x44e   :  { %v1737_v27 = vpop.eup %1736 }
 0x44f   :  { %v470_v30 = vmul.f32 %v1737_v27, %v376_v13 }
 0x4b2   :  { %v473_v28 = vpop.permute.xlu1 %472 }
 0x4b3   :  { %v475_v29 = vmul.f32 %v1737_v27, %v473_v28 }
 0x4b5   :  { %477 = vrot.lane.b32.xlu0 %v475_v29, %s2026_s23 }
 0x527   :  { %v478_v31 = vpop.permute.xlu0 %477 }
 0x528   :  { %v480_v32 = vadd.f32 %v478_v31, %v470_v30 }
 0x52a   :  { %1738 = vtanh.f32 %v480_v32 }
 0x534   :  { %v1739_v33 = vpop.eup %1738 }
 0x535   :  { %483 = vrot.lane.b32.xlu1 %v1739_v33, %s2025_s5 }
 0x5a7   :  { %v484_v41 = vpop.permute.xlu1 %483 }
 0x5a8   :  { %v486_v42 = vmul.f32 %v1737_v27, %v484_v41 }
 0x5aa   :  { %488 = vrot.lane.b32.xlu0 %v486_v42, %s2026_s23 }
 0x61c   :  { %v489_v43 = vpop.permute.xlu0 %488 }
 0x61d   :  { %492 = vst.msk [vmem:[#allocation4 + $0x8] sm:$0xff] %vm125_vm1, %v489_v43  ;;  %1542 = vmatmul.mubr.msk.f32.vlgmr.msra.gmra.mrb[2].mxu1 %vm125_vm1, %v489_v43 }
 0x61e   :  { %1671 = vmatpush3.bf16.msra.mxu1 %v2176_v16  ;;  %1552 = vmatprep.mubr.msk.f32.mxu1 %vm2023_vm0, %v2024_v1 }
 0x61f   :  { %1672 = vmatprep.subr.bf16.mxu1 %v2022_v0 }
 0x622   :  { %1674 = vmatpush3.bf16.msra.mxu1 %v2181_v23 }
 0x623   :  { %1675 = vmatprep.subr.bf16.mxu1 %v2022_v0 }
 0x6f0   :  { %v563_v44 = vpop.f32.mrb[2].mxu1 }
 0x6f1   :  { %v567_v45 = vadd.f32 %v563_v44, %v2226_v50  ;;  %v1543_v46 = vpop.f32.mrb[3].mxu1 }
 0x6f3   :  { %1740 = vtanh.f32 %v567_v45  ;;  %v1371_v49 = vmul.f32 -1.442695, %v567_v45 }
 0x6f5   :  { %1742 = vpow2.f32 %v1371_v49 }
 0x6fd   :  { %v1741_v47 = vpop.eup %1740 }
 0x6fe   :  { %577 = vrot.lane.b32.xlu1 %v1741_v47, %s2025_s5 }
 0x6ff   :  { %v1743_v51 = vpop.eup %1742 }
 0x700   :  { %v571_v53 = vadd.f32 1.0, %v1743_v51 }
 0x702   :  { %1744 = vrcp.f32 %v571_v53 }
 0x70c   :  { %v1745_v55 = vpop.eup %1744 }
 0x70d   :  { %v575_v60 = vmul.f32 %v1745_v55, %v480_v32 }
 0x770   :  { %v578_v57 = vpop.permute.xlu1 %577 }
 0x771   :  { %v580_v59 = vmul.f32 %v1745_v55, %v578_v57 }
 0x773   :  { %582 = vrot.lane.b32.xlu0 %v580_v59, %s2026_s23 }
 0x7e5   :  { %v583_v61 = vpop.permute.xlu0 %582 }
 0x7e6   :  { %v585_v62 = vadd.f32 %v583_v61, %v575_v60  ;;  %v1138_v61 = vld [vmem:[#allocation15 + $0x8] sm:$0xff] }
 0x7e8   :  { %1746 = vtanh.f32 %v585_v62 }
 0x7f2   :  { %v1747_v50 = vpop.eup %1746 }
 0x7f3   :  { %588 = vrot.lane.b32.xlu1 %v1747_v50, %s2025_s5 }
 0x865   :  { %v589_v63 = vpop.permute.xlu1 %588 }
 0x866   :  { %v591_v2 = vmul.f32 %v1745_v55, %v589_v63 }
 0x868   :  { %593 = vrot.lane.b32.xlu0 %v591_v2, %s2026_s23 }
 0x8da   :  { %v594_v3 = vpop.permute.xlu0 %593 }
 0x8db   :  { %597 = vst.msk [vmem:[#allocation4 + $0x10] sm:$0xff] %vm125_vm1, %v594_v3  ;;  %1553 = vmatmul.mubr.msk.f32.vlgmr.msra.gmra.mrb[4].mxu1 %vm125_vm1, %v594_v3  ;;  %v1139_v3 = vld [vmem:[#allocation15 + $0x10] sm:$0xff] }
 0x8dc   :  { %1677 = vmatpush3.bf16.msra.mxu1 %v2176_v16  ;;  %1563 = vmatprep.mubr.msk.f32.mxu1 %vm2023_vm0, %v2024_v1 }
 0x8dd   :  { %1678 = vmatprep.subr.bf16.mxu1 %v2022_v0 }
 0x8e0   :  { %1680 = vmatpush3.bf16.msra.mxu1 %v2181_v23 }
 0x8e1   :  { %1687 = vmatprep.subr.bf16.mxu1 %v2022_v0 }
 0x9ae   :  { %v668_v4 = vpop.f32.mrb[4].mxu1 }
 0x9af   :  { %v672_v5 = vadd.f32 %v668_v4, %v2224_v48  ;;  %v1554_v6 = vpop.f32.mrb[5].mxu1  ;;  %v1140_v4 = vld [vmem:[#allocation15 + $0x18] sm:$0xff] }
 0x9b1   :  { %1748 = vtanh.f32 %v672_v5  ;;  %v1373_v8 = vmul.f32 -1.442695, %v672_v5  ;;  %v1703_v5 = vpack.c.bf16 %v1140_v4, %v1139_v3 }
 0x9b3   :  { %1750 = vpow2.f32 %v1373_v8  ;;  %v1130_v8 = vld [vmem:[#allocation4 + $0x8] sm:$0xff] }
 0x9bb   :  { %v1749_v7 = vpop.eup %1748 }
 0x9bc   :  { %682 = vrot.lane.b32.xlu1 %v1749_v7, %s2025_s5  ;;  %v1129_v7 = vld [vmem:[#allocation4] sm:$0xff] }
 0x9bd   :  { %v1751_v9 = vpop.eup %1750 }
 0x9be   :  { %v676_v10 = vadd.f32 1.0, %v1751_v9  ;;  %v1131_v9 = vld [vmem:[#allocation4 + $0x10] sm:$0xff] }
 0x9c0   :  { %1752 = vrcp.f32 %v676_v10 }
 0x9ca   :  { %v1753_v11 = vpop.eup %1752 }
 0x9cb   :  { %v680_v15 = vmul.f32 %v1753_v11, %v585_v62 }
 0xa2e   :  { %v683_v13 = vpop.permute.xlu1 %682 }
 0xa2f   :  { %v685_v14 = vmul.f32 %v1753_v11, %v683_v13 }
 0xa31   :  { %687 = vrot.lane.b32.xlu0 %v685_v14, %s2026_s23 }
 0xaa3   :  { %v688_v17 = vpop.permute.xlu0 %687 }
 0xaa4   :  { %v690_v18 = vadd.f32 %v688_v17, %v680_v15 }
 0xaa6   :  { %1754 = vtanh.f32 %v690_v18 }
 0xab0   :  { %v1755_v48 = vpop.eup %1754 }
 0xab1   :  { %693 = vrot.lane.b32.xlu1 %v1755_v48, %s2025_s5 }
 0xb23   :  { %v694_v19 = vpop.permute.xlu1 %693 }
 0xb24   :  { %v696_v20 = vmul.f32 %v1753_v11, %v694_v19 }
 0xb26   :  { %698 = vrot.lane.b32.xlu0 %v696_v20, %s2026_s23 }
 0xb98   :  { %v699_v21 = vpop.permute.xlu0 %698 }
 0xb99   :  { %702 = vst.msk [vmem:[#allocation4 + $0x18] sm:$0xff] %vm125_vm1, %v699_v21  ;;  %1564 = vmatmul.mubr.msk.f32.vlgmr.msra.gmra.mrb[6].mxu1 %vm125_vm1, %v699_v21 }
 0xb9a   :  { %1689 = vmatpush3.bf16.msra.mxu1 %v2176_v16  ;;  %1585 = vmatprep.mubr.msk.f32.mxu1 %vm2023_vm0, %v2024_v1 }
 0xb9b   :  { %1690 = vmatprep.subr.bf16.mxu1 %v2022_v0 }
 0xb9e   :  { %1692 = vmatpush3.bf16.msra.mxu1 %v2181_v23 }
 0xba0   :  { %v1132_v10 = vld [vmem:[#allocation4 + $0x18] sm:$0xff] }
 0xc6c   :  { %v773_v22 = vpop.f32.mrb[6].mxu1 }
 0xc6d   :  { %v777_v24 = vadd.f32 %v773_v22, %v2230_v54  ;;  %v1565_v25 = vpop.f32.mrb[7].mxu1 }
 0xc6f   :  { %1756 = vtanh.f32 %v777_v24  ;;  %v1375_v27 = vmul.f32 -1.442695, %v777_v24 }
 0xc71   :  { %1758 = vpow2.f32 %v1375_v27 }
 0xc79   :  { %v1757_v26 = vpop.eup %1756 }
 0xc7a   :  { %787 = vrot.lane.b32.xlu1 %v1757_v26, %s2025_s5 }
 0xc7b   :  { %v1759_v28 = vpop.eup %1758 }
 0xc7c   :  { %v781_v29 = vadd.f32 1.0, %v1759_v28 }
 0xc7e   :  { %1760 = vrcp.f32 %v781_v29 }
 0xc88   :  { %v1761_v30 = vpop.eup %1760 }
 0xc89   :  { %v785_v33 = vmul.f32 %v1761_v30, %v690_v18  ;;  %v2318_v18 = vld [vmem:[%s2401_s7] ss:$0 sm:$0xff]  ;;  %s2027_s7 = smov 96  }
 0xcec   :  { %v788_v31 = vpop.permute.xlu1 %787 }
 0xced   :  { %v790_v32 = vmul.f32 %v1761_v30, %v788_v31 }
 0xcef   :  { %792 = vrot.lane.b32.xlu0 %v790_v32, %s2026_s23 }
 0xd61   :  { %v793_v41 = vpop.permute.xlu0 %792 }
 0xd62   :  { %v795_v42 = vadd.f32 %v793_v41, %v785_v33 }
 0xd64   :  { %1762 = vtanh.f32 %v795_v42 }
 0xd6e   :  { %v1763_v54 = vpop.eup %1762 }
 0xd6f   :  { %798 = vrot.lane.b32.xlu1 %v1763_v54, %s2025_s5 }
 0xde1   :  { %v799_v43 = vpop.permute.xlu1 %798 }
 0xde2   :  { %v801_v44 = vmul.f32 %v1761_v30, %v799_v43 }
 0xde4   :  { %803 = vrot.lane.b32.xlu0 %v801_v44, %s2026_s23 }
 0xe56   :  { %v804_v45 = vpop.permute.xlu0 %803 }
 0xe57   :  { %807 = vst.msk [vmem:[#allocation4 + $0x20] sm:$0xff] %vm125_vm1, %v804_v45  ;;  %1575 = vmatmul.mubr.msk.f32.vlgmr.msra.gmra.mrb[10].mxu0 %vm125_vm1, %v804_v45 }
 0xe58   :  { %1695 = vmatpush3.bf16.msra.mxu0 %v2176_v16  ;;  %1596 = vmatprep.mubr.msk.f32.mxu0 %vm2023_vm0, %v2024_v1 }
 0xe59   :  { %1696 = vmatprep.subr.bf16.mxu0 %v2022_v0 }
 0xe5c   :  { %1698 = vmatpush3.bf16.msra.mxu0 %v2181_v23 }
 0xe5e   :  { %v1133_v11 = vld [vmem:[#allocation4 + $0x20] sm:$0xff] }
 0xf2a   :  { %v878_v46 = vpop.f32.mrb[10].mxu0 }
 0xf2b   :  { %v882_v47 = vadd.f32 %v878_v46, %v2228_v52  ;;  %v1576_v49 = vpop.f32.mrb[11].mxu0  ;;  %v1137_v52 = vld [vmem:[#allocation15] sm:$0xff] }
 0xf2c   :  { %v1699_v62 = vpack.c.bf16 %v1138_v61, %v1137_v52 }
 0xf2d   :  { %1764 = vtanh.f32 %v882_v47  ;;  %v1377_v53 = vmul.f32 -1.442695, %v882_v47 }
 0xf2e   :  { %1700 = vmatprep.subr.bf16.mxu1 %v1699_v62 }
 0xf2f   :  { %1766 = vpow2.f32 %v1377_v53 }
 0xf37   :  { %v1765_v51 = vpop.eup %1764 }
 0xf38   :  { %892 = vrot.lane.b32.xlu1 %v1765_v51, %s2025_s5 }
 0xf39   :  { %v1767_v55 = vpop.eup %1766 }
 0xf3a   :  { %v886_v57 = vadd.f32 1.0, %v1767_v55 }
 0xf3c   :  { %1768 = vrcp.f32 %v886_v57 }
 0xf46   :  { %v1769_v16 = vpop.eup %1768 }
 0xf47   :  { %v890_v0 = vmul.f32 %v1769_v16, %v795_v42 }
 0xfaa   :  { %v893_v59 = vpop.permute.xlu1 %892 }
 0xfab   :  { %v895_v1 = vmul.f32 %v1769_v16, %v893_v59 }
 0xfad   :  { %897 = vrot.lane.b32.xlu0 %v895_v1, %s2026_s23 }
0x101f   :  { %v898_v23 = vpop.permute.xlu0 %897 }
0x1020   :  { %v2301_v60 = vadd.f32 %v898_v23, %v890_v0 }
0x1022   :  { %1770 = vtanh.f32 %v2301_v60 }
0x102c   :  { %v1771_v50 = vpop.eup %1770 }
0x102d   :  { %903 = vrot.lane.b32.xlu1 %v1771_v50, %s2025_s5 }
0x109f   :  { %v904_v63 = vpop.permute.xlu1 %903 }
0x10a0   :  { %v906_v2 = vmul.f32 %v1769_v16, %v904_v63 }
0x10a2   :  { %908 = vrot.lane.b32.xlu0 %v906_v2, %s2026_s23 }
0x1114   :  { %v909_v6 = vpop.permute.xlu0 %908 }
0x1115   :  { %912 = vst.msk [vmem:[#allocation4 + $0x28] sm:$0xff] %vm125_vm1, %v909_v6  ;;  %1586 = vmatmul.mubr.msk.f32.vlgmr.msra.gmra.mrb[8].mxu1 %vm125_vm1, %v909_v6 }
0x1116   :  { %1702 = vmatpush3.bf16.msra.mxu1 %v1699_v62  ;;  %1607 = vmatprep.mubr.msk.f32.mxu1 %vm125_vm1, %v1129_v7 }
0x1117   :  { %1704 = vmatprep.subr.bf16.mxu1 %v1703_v5 }
0x111a   :  { %1706 = vmatpush3.bf16.msra.mxu1 %v1703_v5 }
0x111c   :  { %v1134_v13 = vld [vmem:[#allocation4 + $0x28] sm:$0xff] }
0x111d   :  { %1608 = vmatmul.mubr.msk.f32.vlgmr.msra.gmra.mrb[10].mxu1 %vm125_vm1, %v1130_v8 }
0x111e   :  { %1610 = vmatprep.mubr.msk.f32.mxu1 %vm125_vm1, %v1131_v9 }
0x1121   :  { %1611 = vmatmul.mubr.msk.f32.gmra.mrb[12].mxu1 %vm125_vm1, %v1132_v10 }
0x1122   :  { %1613 = vmatprep.mubr.msk.f32.mxu1 %vm125_vm1, %v1133_v11 }
0x1125   :  { %1614 = vmatmul.mubr.msk.f32.gmra.mrb[14].mxu1 %vm125_vm1, %v1134_v13 }
0x11e8   :  { %v983_v14 = vpop.f32.mrb[8].mxu1 }
0x11e9   :  { %v987_v15 = vadd.f32 %v983_v14, %v2234_v58  ;;  %v1587_v17 = vpop.f32.mrb[9].mxu1 }
0x11eb   :  { %1772 = vtanh.f32 %v987_v15 }
0x11f0   :  { %v1609_v48 = vpop.f32.mrb[10].mxu1 }
0x11f1   :  { %v1244_v19 = vadd.f32 %v1609_v48, %v2318_v18  ;;  %v1238_v20 = vpop.f32.mrb[11].mxu1 }
0x11f2   :  { %v1239_v21 = vadd.f32 %v2318_v18, %v1238_v20 }
0x11f3   :  { %1774 = vtanh.f32 %v1244_v19 }
0x11f4   :  { %1776 = vtanh.f32 %v1239_v21  ;;  %v1612_v22 = vpop.f32.mrb[12].mxu1 }
0x11f5   :  { %v1773_v24 = vpop.eup %1772  ;;  %v1254_v25 = vadd.f32 %v1612_v22, %v2318_v18  ;;  %v1248_v58 = vpop.f32.mrb[13].mxu1 }
0x11f6   :  { %v1249_v26 = vadd.f32 %v2318_v18, %v1248_v58  ;;  %997 = vrot.lane.b32.xlu1 %v1773_v24, %s2025_s5 }
0x11f7   :  { %1778 = vtanh.f32 %v1254_v25 }
0x11f8   :  { %1780 = vtanh.f32 %v1249_v26  ;;  %v1615_v27 = vpop.f32.mrb[14].mxu1 }
0x11f9   :  { %v1264_v28 = vadd.f32 %v1615_v27, %v2318_v18  ;;  %v1258_v29 = vpop.f32.mrb[15].mxu1 }
0x11fa   :  { %v1259_v30 = vadd.f32 %v2318_v18, %v1258_v29 }
0x11fb   :  { %1782 = vtanh.f32 %v1264_v28 }
0x11fc   :  { %1784 = vtanh.f32 %v1259_v30 }
0x11fd   :  { %v1775_v31 = vpop.eup %1774 }
0x11fe   :  { %v1777_v32 = vpop.eup %1776  ;;  %v1294_v33 = vmul.f32 %v1775_v31, %v2185_v34  ;;  %v1379_v34 = vmul.f32 -1.442695, %v987_v15 }
0x11ff   :  { %v1293_v41 = vmul.f32 %v1777_v32, %v2173_v12 }
0x1200   :  { %1302 = vst [vmem:[#allocation17 + $0x8] sm:$0xff] %v1294_v33  ;;  %1786 = vpow2.f32 %v1379_v34 }
0x1201   :  { %v1779_v42 = vpop.eup %1778  ;;  %1301 = vst [vmem:[#allocation17] sm:$0xff] %v1293_v41 }
0x1202   :  { %v1781_v54 = vpop.eup %1780  ;;  %v1296_v43 = vmul.f32 %v1779_v42, %v2193_v36 }
0x1203   :  { %v1295_v44 = vmul.f32 %v1781_v54, %v2188_v35 }
0x1204   :  { %1304 = vst [vmem:[#allocation17 + $0x18] sm:$0xff] %v1296_v43 }
0x1205   :  { %v1783_v45 = vpop.eup %1782  ;;  %1303 = vst [vmem:[#allocation17 + $0x10] sm:$0xff] %v1295_v44 }
0x1206   :  { %v1785_v46 = vpop.eup %1784  ;;  %v1298_v47 = vmul.f32 %v1783_v45, %v2200_v38 }
0x1207   :  { %v1297_v49 = vmul.f32 %v1785_v46, %v2195_v37 }
0x1208   :  { %1306 = vst [vmem:[#allocation17 + $0x28] sm:$0xff] %v1298_v47 }
0x1209   :  { %1305 = vst [vmem:[#allocation17 + $0x20] sm:$0xff] %v1297_v49 }
0x120a   :  { %v1787_v12 = vpop.eup %1786 }
0x120b   :  { %v991_v51 = vadd.f32 1.0, %v1787_v12 }
0x120d   :  { %1788 = vrcp.f32 %v991_v51 }
0x1217   :  { %v1789_v53 = vpop.eup %1788 }
0x1218   :  { %v995_v35 = vmul.f32 %v1789_v53, %v2301_v60 }
0x1268   :  { %v998_v55 = vpop.permute.xlu1 %997 }
0x1269   :  { %v1000_v36 = vmul.f32 %v1789_v53, %v998_v55 }
0x126b   :  { %1002 = vrot.lane.b32.xlu0 %v1000_v36, %s2026_s23 }
0x12dd   :  { %v1003_v57 = vpop.permute.xlu0 %1002 }
0x12de   :  { %v1005_v16 = vadd.f32 %v1003_v57, %v995_v35 }
0x12e0   :  { %1790 = vtanh.f32 %v1005_v16 }
0x12ea   :  { %v1791_v38 = vpop.eup %1790 }
0x12eb   :  { %1008 = vrot.lane.b32.xlu1 %v1791_v38, %s2025_s5 }
0x135d   :  { %v1009_v37 = vpop.permute.xlu1 %1008 }
0x135e   :  { %v1011_v59 = vmul.f32 %v1789_v53, %v1009_v37 }
0x1360   :  { %1013 = vrot.lane.b32.xlu0 %v1011_v59, %s2026_s23 }
0x13d2   :  { %v1014_v1 = vpop.permute.xlu0 %1013 }
0x13d3   :  { %1017 = vst.msk [vmem:[#allocation4 + $0x30] sm:$0xff] %vm125_vm1, %v1014_v1  ;;  %1597 = vmatmul.mubr.msk.f32.vlgmr.msra.gmra.mrb[12].mxu0 %vm125_vm1, %v1014_v1 }
0x13da   :  { %v1135_v0 = vld [vmem:[#allocation4 + $0x30] sm:$0xff] }
0x13db   :  { %1616 = vmatprep.mubr.msk.f32.mxu1 %vm125_vm1, %v1135_v0 }
0x14a6   :  { %v1088_v23 = vpop.f32.mrb[12].mxu0 }
0x14a7   :  { %v1092_v60 = vadd.f32 %v1088_v23, %v2232_v56  ;;  %v1598_v52 = vpop.f32.mrb[13].mxu0 }
0x14a9   :  { %1792 = vtanh.f32 %v1092_v60  ;;  %v1381_v62 = vmul.f32 -1.442695, %v1092_v60 }
0x14ab   :  { %1794 = vpow2.f32 %v1381_v62 }
0x14b3   :  { %v1793_v61 = vpop.eup %1792 }
0x14b4   :  { %1102 = vrot.lane.b32.xlu1 %v1793_v61, %s2025_s5 }
0x14b5   :  { %v1795_v50 = vpop.eup %1794 }
0x14b6   :  { %v1096_v63 = vadd.f32 1.0, %v1795_v50 }
0x14b8   :  { %1796 = vrcp.f32 %v1096_v63 }
0x14c2   :  { %v1797_v2 = vpop.eup %1796 }
0x14c3   :  { %v1100_v5 = vmul.f32 %v1797_v2, %v1005_v16 }
0x1526   :  { %v1103_v3 = vpop.permute.xlu1 %1102 }
0x1527   :  { %v1105_v4 = vmul.f32 %v1797_v2, %v1103_v3 }
0x1529   :  { %1107 = vrot.lane.b32.xlu0 %v1105_v4, %s2026_s23 }
0x159b   :  { %v1108_v6 = vpop.permute.xlu0 %1107 }
0x159c   :  { %v1110_v7 = vadd.f32 %v1108_v6, %v1100_v5 }
0x159e   :  { %1798 = vtanh.f32 %v1110_v7 }
0x15a8   :  { %v1799_v56 = vpop.eup %1798 }
0x15a9   :  { %1113 = vrot.lane.b32.xlu1 %v1799_v56, %s2025_s5 }
0x15ad   :  { %1125 = vrot.lane.b32.xlu1 %v1110_v7, %s2027_s7 }
0x161b   :  { %v1114_v8 = vpop.permute.xlu1 %1113 }
0x161c   :  { %v1116_v9 = vmul.f32 %v1797_v2, %v1114_v8 }
0x161e   :  { %1118 = vrot.lane.b32.xlu0 %v1116_v9, %s2026_s23 }
0x161f   :  { %v1126_v10 = vpop.permute.xlu1 %1125 }
0x1620   :  { %1128 = vst.msk [vmem:[#allocation3] sm:$0xff] %vm125_vm1, %v1126_v10  ;;  %1313 = vst.msk [vmem:[#allocation20] sm:$0xff] %vm125_vm1, %v1126_v10 }
0x1690   :  { %v1119_v11 = vpop.permute.xlu0 %1118 }
0x1691   :  { %1122 = vst.msk [vmem:[#allocation4 + $0x38] sm:$0xff] %vm125_vm1, %v1119_v11  ;;  %1123 = vst.msk [vmem:[#allocation2] sm:$0xff] %vm125_vm1, %v1119_v11 }
0x1692   :  { %1312 = vst.msk [vmem:[#allocation18] sm:$0xff] %vm125_vm1, %v1119_v11 }
0x1698   :  { %v1136_v13 = vld [vmem:[#allocation4 + $0x38] sm:$0xff] }
0x1699   :  { %1617 = vmatmul.mubr.msk.f32.gmra.mrb[16].mxu1 %vm125_vm1, %v1136_v13 }
0x169a   :  { %1947 = shalt.err (!%p1944_p10)
}
0x169b   :  { %s1948_s2 = scalar_lea.hbm %s2403_s9, 128 }
0x169c   :  { %p1949_p11 = scmp.ne.s32.totalorder %s2403_s9, %s1948_s2  ;;  %p1952_p12 = scmp.lt.u32.totalorder %s1948_s2, %s2403_s9 }
0x169e   :  { %p1954_p13 = pnand %p1952_p12, %p1949_p11 }
0x16a0   :  { %1957 = shalt.err (!%p1954_p13)
}
0x16a1   :  { %1339 = dma.vmem_to_hbm [thread:$0]  %s1337_s29, 128, %s2403_s9, [#allocation19]  }
0x16a2   :  { %s2029_s19 = smov [#allocation20]  }
0x16a3   :  { %s1346_s20 = sshll.u32 %s2029_s19, 4  ;;  %s1347_s20 = int_to_ptr.vmem [resolvable:$true] %s1346_s20 }
0x16a4   :  { %s1958_s21 = scalar_lea.vmem %s1347_s20, 128  ;;  %p1963_p1 = scmp.lt.s32.totalorder %s1347_s20, %s1347_s20 }
0x16a5   :  { %p1959_p0 = scmp.ne.s32.totalorder %s1347_s20, %s1958_s21  ;;  %p1964_p2 = scmp.lt.s32.totalorder %s1958_s21, %s1958_s21 }
0x16a7   :  { %p1965_p3 = por %p1964_p2, %p1963_p1 }
0x16a9   :  { %p1966_p4 = pnand %p1965_p3, %p1959_p0 }
0x16ab   :  { %1969 = shalt.err (!%p1966_p4)
}
0x16ac   :  { %s1970_s4 = scalar_lea.hbm %s2404_s10, 128 }
0x16ad   :  { %p1971_p5 = scmp.ne.s32.totalorder %s2404_s10, %s1970_s4  ;;  %p1974_p6 = scmp.lt.u32.totalorder %s1970_s4, %s2404_s10 }
0x16af   :  { %p1976_p7 = pnand %p1974_p6, %p1971_p5 }
0x16b1   :  { %1979 = shalt.err (!%p1976_p7)
}
0x16b2   :  { %1349 = dma.vmem_to_hbm [thread:$0]  %s1347_s20, 128, %s2404_s10, [#allocation19]  }
0x16b3   :  { %s2030_s24 = smov [#allocation17]  }
0x16b4   :  { %s1323_s25 = sshll.u32 %s2030_s24, 4  ;;  %s1324_s25 = int_to_ptr.vmem [resolvable:$true] %s1323_s25 }
0x16b5   :  { %s1980_s10 = scalar_lea.vmem %s1324_s25, 1024  ;;  %p1985_p9 = scmp.lt.s32.totalorder %s1324_s25, %s1324_s25 }
0x16b6   :  { %p1981_p8 = scmp.ne.s32.totalorder %s1324_s25, %s1980_s10  ;;  %p1986_p10 = scmp.lt.s32.totalorder %s1980_s10, %s1980_s10 }
0x16b8   :  { %p1987_p11 = por %p1986_p10, %p1985_p9 }
0x16ba   :  { %p1988_p12 = pnand %p1987_p11, %p1981_p8 }
0x176c   :  { %v1618_v14 = vpop.f32.mrb[16].mxu1 }
0x176d   :  { %v1274_v15 = vadd.f32 %v1618_v14, %v2318_v18  ;;  %v1268_v17 = vpop.f32.mrb[17].mxu1 }
0x176e   :  { %v1269_v48 = vadd.f32 %v2318_v18, %v1268_v17 }
0x176f   :  { %1800 = vtanh.f32 %v1274_v15 }
0x1770   :  { %1802 = vtanh.f32 %v1269_v48 }
0x1779   :  { %v1801_v19 = vpop.eup %1800 }
0x177a   :  { %v1803_v20 = vpop.eup %1802  ;;  %v1300_v21 = vmul.f32 %v1801_v19, %v2208_v40 }
0x177b   :  { %v1299_v22 = vmul.f32 %v1803_v20, %v2203_v39 }
0x177c   :  { %1308 = vst [vmem:[#allocation17 + $0x38] sm:$0xff] %v1300_v21 }
0x177d   :  { %1307 = vst [vmem:[#allocation17 + $0x30] sm:$0xff] %v1299_v22 }
0x177e   :  { %1991 = shalt.err (!%p1988_p12)
}
0x177f   :  { %s1992_s29 = scalar_lea.hbm %s2402_s8, 1024 }
0x1780   :  { %p1993_p13 = scmp.ne.s32.totalorder %s2402_s8, %s1992_s29  ;;  %p1996_p0 = scmp.lt.u32.totalorder %s1992_s29, %s2402_s8 }
0x1782   :  { %p1998_p1 = pnand %p1996_p0, %p1993_p13 }
0x1784   :  { %2001 = shalt.err (!%p1998_p1)
}
0x1785   :  { %1329 = dma.vmem_to_hbm [thread:$0]  %s1324_s25, 1024, %s2402_s8, [#allocation8], %s2017_s14, %s2017_s14, %s2018_s17  }
0x1786   :  { %2010 = dma.done.wait [#allocation8], 1024  }
0x1787   :  { %2011 = vsyncadd [#allocation8], 4294966272 }
0x1788   :  { %2012 = dma.done.wait [#allocation19], 256  }
0x1789   :  { %2013 = vsyncadd [#allocation19], 4294967040 }
0x178a   :  { %1359 = vsyncpa [#allocation7], 1 }
0x178b   :  { %1360 = vsyncpa [#allocation10], 1 }
0x178c   :  { %1361 = vsyncpa [#allocation13], 1 }
0x178d   :  { %1362 = vsyncpa [#allocation16], 1 }
0x178e   :  { %1363 = vsyncpa [#allocation8], 1 }
0x178f   :  { %1364 = vsyncpa [#allocation19], 1 }

</bundles_post_ra>
